<compile_context>
chip_gen: v5e
topology: v5e:2x2
jax: 0.10.0
libtpu: 0.0.40
codegen_flags: <defaults>
</compile_context>

<pallas_src>
import functools

import numpy as np
import jax
import jax.numpy as jnp
from jax.experimental import pallas as pl
from jax.experimental.pallas import tpu as pltpu

BN_EPS = 1e-5


# ---------------------------------------------------------------------------
# Kernel 1: stride-2 3x3 conv (pad=1), in-kernel tap accumulation + BN partials
# ---------------------------------------------------------------------------
def _down_conv_kernel(p00, p01, p10, p11, w_ref, y_ref, s_ref, *, hd, wd):
    """One image per grid step.  Inputs are the 4 even/odd (H,W) phases of the
    zero-padded image (bf16), so every tap is an unstrided static slice.
    Emits the raw conv output (hd*wd, Co) in f32 plus per-image partial BN sums."""
    phases = (p00, p01, p10, p11)
    co = w_ref.shape[-1]
    acc = jnp.zeros((hd * wd, co), jnp.float32)
    for dy in range(3):
        for dx in range(3):
            ph = phases[(dy % 2) * 2 + (dx % 2)]
            oy, ox = dy // 2, dx // 2
            tap = ph[0, oy:oy + hd, ox:ox + wd, :]           # (hd, wd, Cin) bf16
            tap = tap.reshape(hd * wd, tap.shape[-1])        # merge leading dims
            acc = acc + jnp.dot(tap, w_ref[dy, dx],
                                preferred_element_type=jnp.float32)
    y_ref[0] = acc
    psum = jnp.sum(acc, axis=0, keepdims=True)               # (1, Co)
    psq = jnp.sum(acc * acc, axis=0, keepdims=True)          # (1, Co)
    s_ref[0] = jnp.concatenate([psum, psq], axis=0)          # (2, Co)


def down_conv(phases, w4, hd, wd):
    n, hph, wph, cin = phases[0].shape
    co = w4.shape[-1]
    kern = functools.partial(_down_conv_kernel, hd=hd, wd=wd)
    return pl.pallas_call(
        kern,
        grid=(n,),
        in_specs=[pl.BlockSpec((1, hph, wph, cin), lambda i: (i, 0, 0, 0))] * 4
        + [pl.BlockSpec((3, 3, cin, co), lambda i: (0, 0, 0, 0))],
        out_specs=[pl.BlockSpec((1, hd * wd, co), lambda i: (i, 0, 0)),
                   pl.BlockSpec((1, 2, co), lambda i: (i, 0, 0))],
        out_shape=[jax.ShapeDtypeStruct((n, hd * wd, co), jnp.float32),
                   jax.ShapeDtypeStruct((n, 2, co), jnp.float32)],
        compiler_params=pltpu.CompilerParams(dimension_semantics=("parallel",)),
    )(*phases, w4)


# ---------------------------------------------------------------------------
# Kernel 2: fused  BN(affine)+SiLU+x2 residual  ->  bilinear x2 up  ->  3x3 conv
# ---------------------------------------------------------------------------
def _up_fused_kernel(y_ref, sc_ref, sh_ref, ah_ref, g_ref, o_ref, s_ref,
                     *, hu, res_scale):
    """Per image: apply the down-BN affine + SiLU (+ x2 Identity-bottleneck residual)
    to the VMEM-resident (Hd, Wd*Ci) tile, then:
      * ah_ref (Hu+2, Hd): H-axis bilinear interpolation + zero padding (one matmul)
      * g_ref[dy] (Wd*Ci, Wu*Co): W-axis interpolation + padding + the conv's W-taps,
        accumulated over the 3 H-taps dy.
    Emits the raw up-conv output (Hu, Wu*Co) plus per-image partial BN sums."""
    hp = y_ref[0]                                            # (hd, wd*ci) f32
    z = hp * sc_ref[...] + sh_ref[...]                       # BN (batch-stat affine)
    z = (z * pl.reciprocal(1.0 + jnp.exp(-z), approx=True)) * res_scale   # SiLU, x2
    t = jnp.dot(ah_ref[...], z, preferred_element_type=jnp.float32)       # (hu+2, wd*ci)
    acc = jnp.zeros((hu, g_ref.shape[-1]), jnp.float32)
    for dy in range(3):
        lhs = t[dy:dy + hu, :].astype(jnp.bfloat16)          # (hu, wd*ci)
        acc = acc + jnp.dot(lhs, g_ref[dy], preferred_element_type=jnp.float32)
    o_ref[0] = acc
    psum = jnp.sum(acc, axis=0, keepdims=True)               # (1, wu*co)
    psq = jnp.sum(acc * acc, axis=0, keepdims=True)
    s_ref[0] = jnp.concatenate([psum, psq], axis=0)          # (2, wu*co)


def up_fused(y2, sc_d, sh_d, ah_pad, gmat, hu, res_scale):
    n, hd, wci = y2.shape
    wuco = gmat.shape[-1]
    kern = functools.partial(_up_fused_kernel, hu=hu, res_scale=res_scale)
    return pl.pallas_call(
        kern,
        grid=(n,),
        in_specs=[pl.BlockSpec((1, hd, wci), lambda i: (i, 0, 0)),
                  pl.BlockSpec((1, wci), lambda i: (0, 0)),
                  pl.BlockSpec((1, wci), lambda i: (0, 0)),
                  pl.BlockSpec(ah_pad.shape, lambda i: (0, 0)),
                  pl.BlockSpec(gmat.shape, lambda i: (0, 0, 0))],
        out_specs=[pl.BlockSpec((1, hu, wuco), lambda i: (i, 0, 0)),
                   pl.BlockSpec((1, 2, wuco), lambda i: (i, 0, 0))],
        out_shape=[jax.ShapeDtypeStruct((n, hu, wuco), jnp.float32),
                   jax.ShapeDtypeStruct((n, 2, wuco), jnp.float32)],
        compiler_params=pltpu.CompilerParams(dimension_semantics=("parallel",)),
    )(y2, sc_d, sh_d, ah_pad, gmat)


# ---------------------------------------------------------------------------
# Kernel 3: final BatchNorm (global batch stats) + SiLU, tiled elementwise
# ---------------------------------------------------------------------------
def _bn_silu_kernel(y_ref, sc_ref, sh_ref, o_ref):
    z = y_ref[0] * sc_ref[...] + sh_ref[...]
    o_ref[0] = z * pl.reciprocal(1.0 + jnp.exp(-z), approx=True)


def bn_silu(y, sc, sh):
    n, r, c = y.shape
    return pl.pallas_call(
        _bn_silu_kernel,
        grid=(n,),
        in_specs=[pl.BlockSpec((1, r, c), lambda i: (i, 0, 0)),
                  pl.BlockSpec((1, c), lambda i: (0, 0)),
                  pl.BlockSpec((1, c), lambda i: (0, 0))],
        out_specs=pl.BlockSpec((1, r, c), lambda i: (i, 0, 0)),
        out_shape=jax.ShapeDtypeStruct((n, r, c), jnp.float32),
        compiler_params=pltpu.CompilerParams(dimension_semantics=("parallel",)),
    )(y, sc, sh)


# ---------------------------------------------------------------------------
# Wrapper-side operator construction (layout plumbing / tiny weight preprocessing)
# ---------------------------------------------------------------------------
def bilinear_matrix(n_in, n_out):
    """Interpolation matrix of UpsamplingBilinear2d (align_corners=True)."""
    A = np.zeros((n_out, n_in), dtype=np.float32)
    for u in range(n_out):
        src = u * (n_in - 1) / (n_out - 1) if n_out > 1 else 0.0
        h0 = int(np.floor(src))
        h1 = min(h0 + 1, n_in - 1)
        frac = src - h0
        A[u, h0] += 1.0 - frac
        A[u, h1] += frac
    return A


def build_up_operators(w_up, hd, wd):
    """w_up: PyTorch (Co, Ci, 3, 3).  Returns
       ah_pad (2hd+2, hd) f32  : H-axis bilinear interp + conv zero padding,
       gmat  (3, wd*Ci, 2wd*Co) bf16 : W-axis interp + padding + conv W-taps, per dy."""
    co_, ci_ = w_up.shape[0], w_up.shape[1]
    hu, wu = 2 * hd, 2 * wd
    ah = bilinear_matrix(hd, hu)
    ah_pad = np.zeros((hu + 2, hd), np.float32)
    ah_pad[1:hu + 1] = ah
    aw = bilinear_matrix(wd, wu)
    aw_pad = np.zeros((wu + 2, wd), np.float32)
    aw_pad[1:wu + 1] = aw
    aw_slices = np.stack([aw_pad[dx:dx + wu, :] for dx in range(3)], axis=0)  # (3, wu, wd)
    # g[dy, w, ci, j, co] = sum_dx aw_pad[j+dx, w] * w_up[co, ci, dy, dx]
    g = jnp.einsum('djw,ocyd->ywcjo', jnp.asarray(aw_slices),
                   w_up.astype(jnp.float32))                                  # (3, wd, ci, wu, co)
    gmat = g.reshape(3, wd * ci_, wu * co_).astype(jnp.bfloat16)
    return jnp.asarray(ah_pad), gmat


# ---------------------------------------------------------------------------
# UNetLevel forward
# ---------------------------------------------------------------------------
def unet_level_forward(x_nchw, params):
    x = jnp.transpose(x_nchw, (0, 2, 3, 1)).astype(jnp.float32)   # NCHW -> NHWC
    n, h, w, cin = x.shape
    assert h % 2 == 0 and w % 2 == 0, "even spatial dims expected for stride-2 conv"
    hd, wd = h // 2, w // 2
    hu, wu = 2 * hd, 2 * wd
    co = params["w_down"].shape[0]      # io
    cout = params["w_up"].shape[0]      # ic

    # ---- down: stride-2 conv (phase-decomposed bf16 input) -> raw y + BN partials ----
    xp = jnp.pad(x, ((0, 0), (1, 1), (1, 1), (0, 0)))
    phases = [xp[:, p::2, q::2, :].astype(jnp.bfloat16)
              for p in (0, 1) for q in (0, 1)]                    # 4 x (n, hd+1, wd+1, cin)
    w4_d = jnp.transpose(params["w_down"], (2, 3, 1, 0)).astype(jnp.bfloat16)  # (3,3,cin,co)
    y_d, st_d = down_conv(phases, w4_d, hd, wd)                   # (n,hd*wd,co), (n,2,co)

    # ---- fold global batch stats into a per-channel affine (tiny JAX reduction) ----
    m_d = n * hd * wd
    s_d = jnp.sum(st_d, axis=0)                                   # (2, co)
    mean_d = s_d[0] / m_d
    var_d = jnp.maximum(s_d[1] / m_d - mean_d * mean_d, 0.0)      # biased (BN train mode)
    scale_d = params["gamma_d"] * jax.lax.rsqrt(var_d + BN_EPS)
    shift_d = params["beta_d"] - mean_d * scale_d
    sc_d = jnp.tile(scale_d, wd)[None, :]                         # (1, wd*co)
    sh_d = jnp.tile(shift_d, wd)[None, :]

    # ---- up: BN+SiLU+x2 residual, bilinear x2 + 3x3 conv fused in one kernel ----
    ah_pad, gmat = build_up_operators(params["w_up"], hd, wd)
    y2 = y_d.reshape(n, hd, wd * co)                              # free row-major reshape
    y_u, st_u = up_fused(y2, sc_d, sh_d, ah_pad, gmat, hu, res_scale=2.0)

    # ---- final BN + SiLU (global batch stats over the up-conv output) ----
    m_u = n * hu * wu
    s_u = jnp.sum(st_u, axis=0).reshape(2, wu, cout).sum(axis=1)  # (2, cout)
    mean_u = s_u[0] / m_u
    var_u = jnp.maximum(s_u[1] / m_u - mean_u * mean_u, 0.0)
    scale_u = params["gamma_u"] * jax.lax.rsqrt(var_u + BN_EPS)
    shift_u = params["beta_u"] - mean_u * scale_u
    sc_u = jnp.tile(scale_u, wu)[None, :]                         # (1, wu*cout)
    sh_u = jnp.tile(shift_u, wu)[None, :]
    out = bn_silu(y_u, sc_u, sh_u)                                # (n, hu, wu*cout)

    out = out.reshape(n, hu, wu, cout)
    return jnp.transpose(out, (0, 3, 1, 2))                       # NHWC -> NCHW


def init_params(key, ic, io):
    k1, k2, k3, k4, k5, k6 = jax.random.split(key, 6)
    return dict(
        w_down=jax.random.normal(k1, (io, ic, 3, 3), jnp.float32) / np.sqrt(9 * ic),
        w_up=jax.random.normal(k2, (ic, io, 3, 3), jnp.float32) / np.sqrt(9 * io),
        gamma_d=1.0 + 0.1 * jax.random.normal(k3, (io,), jnp.float32),
        beta_d=0.1 * jax.random.normal(k4, (io,), jnp.float32),
        gamma_u=1.0 + 0.1 * jax.random.normal(k5, (ic,), jnp.float32),
        beta_u=0.1 * jax.random.normal(k6, (ic,), jnp.float32),
    )


if __name__ == "__main__":
    key = jax.random.PRNGKey(0)
    kx, kp = jax.random.split(key)

    N, ic, io, H, W = 2, 4, 8, 16, 16
    x = jax.random.normal(kx, (N, ic, H, W), jnp.float32)   # NCHW, like the PyTorch module
    params = init_params(kp, ic, io)

    fwd = jax.jit(unet_level_forward)
    y = fwd(x, params)
    jax.block_until_ready(y)

    assert y.shape == (N, ic, H, W), y.shape
    assert bool(jnp.all(jnp.isfinite(y)))
    print("KERNEL_OK")
</pallas_src>

<mosaic_0001>
module attributes {stable_mosaic.version = 11 : i64} {
  func.func @_down_conv_kernel(%arg0: i32, %arg1: memref<1x9x9x4xbf16, #tpu.memory_space<vmem>>, %arg2: memref<1x9x9x4xbf16, #tpu.memory_space<vmem>>, %arg3: memref<1x9x9x4xbf16, #tpu.memory_space<vmem>>, %arg4: memref<1x9x9x4xbf16, #tpu.memory_space<vmem>>, %arg5: memref<3x3x4x8xbf16, #tpu.memory_space<vmem>>, %arg6: memref<1x64x8xf32, #tpu.memory_space<vmem>>, %arg7: memref<1x2x8xf32, #tpu.memory_space<vmem>>) attributes {dimension_semantics = [#tpu.dimension_semantics<parallel>], iteration_bounds = array<i64: 2>, scalar_prefetch = 0 : i64, scratch_operands = 0 : i64, tpu.core_type = #tpu.core_type<tc>, window_params = [{transform_indices = @transform_0, window_bounds = array<i64: 1, 9, 9, 4>}, {transform_indices = @transform_1, window_bounds = array<i64: 1, 9, 9, 4>}, {transform_indices = @transform_2, window_bounds = array<i64: 1, 9, 9, 4>}, {transform_indices = @transform_3, window_bounds = array<i64: 1, 9, 9, 4>}, {pipeline_mode = #tpu.pipeline_mode<synchronous>, transform_indices = @transform_4, window_bounds = array<i64: 3, 3, 4, 8>}, {transform_indices = @transform_5, window_bounds = array<i64: 1, 64, 8>}, {transform_indices = @transform_6, window_bounds = array<i64: 1, 2, 8>}]} {
    %cst = arith.constant 0.000000e+00 : f32
    %0 = vector.broadcast %cst : f32 to vector<64x8xf32>
    %c0 = arith.constant 0 : index
    %c0_0 = arith.constant 0 : index
    %c0_1 = arith.constant 0 : index
    %c0_2 = arith.constant 0 : index
    %1 = vector.load %arg1[%c0, %c0_0, %c0_1, %c0_2] : memref<1x9x9x4xbf16, #tpu.memory_space<vmem>>, vector<1x8x8x4xbf16>
    %2 = vector.shape_cast %1 : vector<1x8x8x4xbf16> to vector<8x8x4xbf16>
    %3 = vector.shape_cast %2 : vector<8x8x4xbf16> to vector<64x4xbf16>
    %c0_3 = arith.constant 0 : index
    %c0_4 = arith.constant 0 : index
    %c0_5 = arith.constant 0 : index
    %c0_6 = arith.constant 0 : index
    %4 = vector.load %arg5[%c0_3, %c0_4, %c0_5, %c0_6] : memref<3x3x4x8xbf16, #tpu.memory_space<vmem>>, vector<1x1x4x8xbf16>
    %5 = vector.shape_cast %4 : vector<1x1x4x8xbf16> to vector<4x8xbf16>
    %cst_7 = arith.constant dense<0.000000e+00> : vector<64x8xf32>
    %6 = tpu.matmul %3, %5, %cst_7 {dimension_numbers = #tpu.dot_dimension_numbers<[1], [0], [0], [1], [0, 0, 1, 1], [], []>} : vector<64x4xbf16>, vector<4x8xbf16>, vector<64x8xf32> -> vector<64x8xf32>
    %7 = arith.addf %0, %6 : vector<64x8xf32>
    %c0_8 = arith.constant 0 : index
    %c0_9 = arith.constant 0 : index
    %c0_10 = arith.constant 0 : index
    %c0_11 = arith.constant 0 : index
    %8 = vector.load %arg2[%c0_8, %c0_9, %c0_10, %c0_11] : memref<1x9x9x4xbf16, #tpu.memory_space<vmem>>, vector<1x8x8x4xbf16>
    %9 = vector.shape_cast %8 : vector<1x8x8x4xbf16> to vector<8x8x4xbf16>
    %10 = vector.shape_cast %9 : vector<8x8x4xbf16> to vector<64x4xbf16>
    %c0_12 = arith.constant 0 : index
    %c1 = arith.constant 1 : index
    %c0_13 = arith.constant 0 : index
    %c0_14 = arith.constant 0 : index
    %11 = vector.load %arg5[%c0_12, %c1, %c0_13, %c0_14] : memref<3x3x4x8xbf16, #tpu.memory_space<vmem>>, vector<1x1x4x8xbf16>
    %12 = vector.shape_cast %11 : vector<1x1x4x8xbf16> to vector<4x8xbf16>
    %cst_15 = arith.constant dense<0.000000e+00> : vector<64x8xf32>
    %13 = tpu.matmul %10, %12, %cst_15 {dimension_numbers = #tpu.dot_dimension_numbers<[1], [0], [0], [1], [0, 0, 1, 1], [], []>} : vector<64x4xbf16>, vector<4x8xbf16>, vector<64x8xf32> -> vector<64x8xf32>
    %14 = arith.addf %7, %13 : vector<64x8xf32>
    %c0_16 = arith.constant 0 : index
    %c0_17 = arith.constant 0 : index
    %c1_18 = arith.constant 1 : index
    %c0_19 = arith.constant 0 : index
    %15 = vector.load %arg1[%c0_16, %c0_17, %c1_18, %c0_19] : memref<1x9x9x4xbf16, #tpu.memory_space<vmem>>, vector<1x8x8x4xbf16>
    %16 = vector.shape_cast %15 : vector<1x8x8x4xbf16> to vector<8x8x4xbf16>
    %17 = vector.shape_cast %16 : vector<8x8x4xbf16> to vector<64x4xbf16>
    %c0_20 = arith.constant 0 : index
    %c2 = arith.constant 2 : index
    %c0_21 = arith.constant 0 : index
    %c0_22 = arith.constant 0 : index
    %18 = vector.load %arg5[%c0_20, %c2, %c0_21, %c0_22] : memref<3x3x4x8xbf16, #tpu.memory_space<vmem>>, vector<1x1x4x8xbf16>
    %19 = vector.shape_cast %18 : vector<1x1x4x8xbf16> to vector<4x8xbf16>
    %cst_23 = arith.constant dense<0.000000e+00> : vector<64x8xf32>
    %20 = tpu.matmul %17, %19, %cst_23 {dimension_numbers = #tpu.dot_dimension_numbers<[1], [0], [0], [1], [0, 0, 1, 1], [], []>} : vector<64x4xbf16>, vector<4x8xbf16>, vector<64x8xf32> -> vector<64x8xf32>
    %21 = arith.addf %14, %20 : vector<64x8xf32>
    %c0_24 = arith.constant 0 : index
    %c0_25 = arith.constant 0 : index
    %c0_26 = arith.constant 0 : index
    %c0_27 = arith.constant 0 : index
    %22 = vector.load %arg3[%c0_24, %c0_25, %c0_26, %c0_27] : memref<1x9x9x4xbf16, #tpu.memory_space<vmem>>, vector<1x8x8x4xbf16>
    %23 = vector.shape_cast %22 : vector<1x8x8x4xbf16> to vector<8x8x4xbf16>
    %24 = vector.shape_cast %23 : vector<8x8x4xbf16> to vector<64x4xbf16>
    %c1_28 = arith.constant 1 : index
    %c0_29 = arith.constant 0 : index
    %c0_30 = arith.constant 0 : index
    %c0_31 = arith.constant 0 : index
    %25 = vector.load %arg5[%c1_28, %c0_29, %c0_30, %c0_31] : memref<3x3x4x8xbf16, #tpu.memory_space<vmem>>, vector<1x1x4x8xbf16>
    %26 = vector.shape_cast %25 : vector<1x1x4x8xbf16> to vector<4x8xbf16>
    %cst_32 = arith.constant dense<0.000000e+00> : vector<64x8xf32>
    %27 = tpu.matmul %24, %26, %cst_32 {dimension_numbers = #tpu.dot_dimension_numbers<[1], [0], [0], [1], [0, 0, 1, 1], [], []>} : vector<64x4xbf16>, vector<4x8xbf16>, vector<64x8xf32> -> vector<64x8xf32>
    %28 = arith.addf %21, %27 : vector<64x8xf32>
    %c0_33 = arith.constant 0 : index
    %c0_34 = arith.constant 0 : index
    %c0_35 = arith.constant 0 : index
    %c0_36 = arith.constant 0 : index
    %29 = vector.load %arg4[%c0_33, %c0_34, %c0_35, %c0_36] : memref<1x9x9x4xbf16, #tpu.memory_space<vmem>>, vector<1x8x8x4xbf16>
    %30 = vector.shape_cast %29 : vector<1x8x8x4xbf16> to vector<8x8x4xbf16>
    %31 = vector.shape_cast %30 : vector<8x8x4xbf16> to vector<64x4xbf16>
    %c1_37 = arith.constant 1 : index
    %c1_38 = arith.constant 1 : index
    %c0_39 = arith.constant 0 : index
    %c0_40 = arith.constant 0 : index
    %32 = vector.load %arg5[%c1_37, %c1_38, %c0_39, %c0_40] : memref<3x3x4x8xbf16, #tpu.memory_space<vmem>>, vector<1x1x4x8xbf16>
    %33 = vector.shape_cast %32 : vector<1x1x4x8xbf16> to vector<4x8xbf16>
    %cst_41 = arith.constant dense<0.000000e+00> : vector<64x8xf32>
    %34 = tpu.matmul %31, %33, %cst_41 {dimension_numbers = #tpu.dot_dimension_numbers<[1], [0], [0], [1], [0, 0, 1, 1], [], []>} : vector<64x4xbf16>, vector<4x8xbf16>, vector<64x8xf32> -> vector<64x8xf32>
    %35 = arith.addf %28, %34 : vector<64x8xf32>
    %c0_42 = arith.constant 0 : index
    %c0_43 = arith.constant 0 : index
    %c1_44 = arith.constant 1 : index
    %c0_45 = arith.constant 0 : index
    %36 = vector.load %arg3[%c0_42, %c0_43, %c1_44, %c0_45] : memref<1x9x9x4xbf16, #tpu.memory_space<vmem>>, vector<1x8x8x4xbf16>
    %37 = vector.shape_cast %36 : vector<1x8x8x4xbf16> to vector<8x8x4xbf16>
    %38 = vector.shape_cast %37 : vector<8x8x4xbf16> to vector<64x4xbf16>
    %c1_46 = arith.constant 1 : index
    %c2_47 = arith.constant 2 : index
    %c0_48 = arith.constant 0 : index
    %c0_49 = arith.constant 0 : index
    %39 = vector.load %arg5[%c1_46, %c2_47, %c0_48, %c0_49] : memref<3x3x4x8xbf16, #tpu.memory_space<vmem>>, vector<1x1x4x8xbf16>
    %40 = vector.shape_cast %39 : vector<1x1x4x8xbf16> to vector<4x8xbf16>
    %cst_50 = arith.constant dense<0.000000e+00> : vector<64x8xf32>
    %41 = tpu.matmul %38, %40, %cst_50 {dimension_numbers = #tpu.dot_dimension_numbers<[1], [0], [0], [1], [0, 0, 1, 1], [], []>} : vector<64x4xbf16>, vector<4x8xbf16>, vector<64x8xf32> -> vector<64x8xf32>
    %42 = arith.addf %35, %41 : vector<64x8xf32>
    %c0_51 = arith.constant 0 : index
    %c1_52 = arith.constant 1 : index
    %c0_53 = arith.constant 0 : index
    %c0_54 = arith.constant 0 : index
    %43 = vector.load %arg1[%c0_51, %c1_52, %c0_53, %c0_54] : memref<1x9x9x4xbf16, #tpu.memory_space<vmem>>, vector<1x8x8x4xbf16>
    %44 = vector.shape_cast %43 : vector<1x8x8x4xbf16> to vector<8x8x4xbf16>
    %45 = vector.shape_cast %44 : vector<8x8x4xbf16> to vector<64x4xbf16>
    %c2_55 = arith.constant 2 : index
    %c0_56 = arith.constant 0 : index
    %c0_57 = arith.constant 0 : index
    %c0_58 = arith.constant 0 : index
    %46 = vector.load %arg5[%c2_55, %c0_56, %c0_57, %c0_58] : memref<3x3x4x8xbf16, #tpu.memory_space<vmem>>, vector<1x1x4x8xbf16>
    %47 = vector.shape_cast %46 : vector<1x1x4x8xbf16> to vector<4x8xbf16>
    %cst_59 = arith.constant dense<0.000000e+00> : vector<64x8xf32>
    %48 = tpu.matmul %45, %47, %cst_59 {dimension_numbers = #tpu.dot_dimension_numbers<[1], [0], [0], [1], [0, 0, 1, 1], [], []>} : vector<64x4xbf16>, vector<4x8xbf16>, vector<64x8xf32> -> vector<64x8xf32>
    %49 = arith.addf %42, %48 : vector<64x8xf32>
    %c0_60 = arith.constant 0 : index
    %c1_61 = arith.constant 1 : index
    %c0_62 = arith.constant 0 : index
    %c0_63 = arith.constant 0 : index
    %50 = vector.load %arg2[%c0_60, %c1_61, %c0_62, %c0_63] : memref<1x9x9x4xbf16, #tpu.memory_space<vmem>>, vector<1x8x8x4xbf16>
    %51 = vector.shape_cast %50 : vector<1x8x8x4xbf16> to vector<8x8x4xbf16>
    %52 = vector.shape_cast %51 : vector<8x8x4xbf16> to vector<64x4xbf16>
    %c2_64 = arith.constant 2 : index
    %c1_65 = arith.constant 1 : index
    %c0_66 = arith.constant 0 : index
    %c0_67 = arith.constant 0 : index
    %53 = vector.load %arg5[%c2_64, %c1_65, %c0_66, %c0_67] : memref<3x3x4x8xbf16, #tpu.memory_space<vmem>>, vector<1x1x4x8xbf16>
    %54 = vector.shape_cast %53 : vector<1x1x4x8xbf16> to vector<4x8xbf16>
    %cst_68 = arith.constant dense<0.000000e+00> : vector<64x8xf32>
    %55 = tpu.matmul %52, %54, %cst_68 {dimension_numbers = #tpu.dot_dimension_numbers<[1], [0], [0], [1], [0, 0, 1, 1], [], []>} : vector<64x4xbf16>, vector<4x8xbf16>, vector<64x8xf32> -> vector<64x8xf32>
    %56 = arith.addf %49, %55 : vector<64x8xf32>
    %c0_69 = arith.constant 0 : index
    %c1_70 = arith.constant 1 : index
    %c1_71 = arith.constant 1 : index
    %c0_72 = arith.constant 0 : index
    %57 = vector.load %arg1[%c0_69, %c1_70, %c1_71, %c0_72] : memref<1x9x9x4xbf16, #tpu.memory_space<vmem>>, vector<1x8x8x4xbf16>
    %58 = vector.shape_cast %57 : vector<1x8x8x4xbf16> to vector<8x8x4xbf16>
    %59 = vector.shape_cast %58 : vector<8x8x4xbf16> to vector<64x4xbf16>
    %c2_73 = arith.constant 2 : index
    %c2_74 = arith.constant 2 : index
    %c0_75 = arith.constant 0 : index
    %c0_76 = arith.constant 0 : index
    %60 = vector.load %arg5[%c2_73, %c2_74, %c0_75, %c0_76] : memref<3x3x4x8xbf16, #tpu.memory_space<vmem>>, vector<1x1x4x8xbf16>
    %61 = vector.shape_cast %60 : vector<1x1x4x8xbf16> to vector<4x8xbf16>
    %cst_77 = arith.constant dense<0.000000e+00> : vector<64x8xf32>
    %62 = tpu.matmul %59, %61, %cst_77 {dimension_numbers = #tpu.dot_dimension_numbers<[1], [0], [0], [1], [0, 0, 1, 1], [], []>} : vector<64x4xbf16>, vector<4x8xbf16>, vector<64x8xf32> -> vector<64x8xf32>
    %63 = arith.addf %56, %62 : vector<64x8xf32>
    %c0_78 = arith.constant 0 : index
    %c0_79 = arith.constant 0 : index
    %c0_80 = arith.constant 0 : index
    %64 = vector.load %arg6[%c0_78, %c0_79, %c0_80] : memref<1x64x8xf32, #tpu.memory_space<vmem>>, vector<1x64x8xf32>
    %65 = vector.shape_cast %64 : vector<1x64x8xf32> to vector<64x8xf32>
    %66 = vector.shape_cast %63 : vector<64x8xf32> to vector<1x64x8xf32>
    tpu.vector_store %arg6[%c0_78, %c0_79, %c0_80], %66 {strides = array<i32>} : memref<1x64x8xf32, #tpu.memory_space<vmem>>, vector<1x64x8xf32>,
    %cst_81 = arith.constant dense<0.000000e+00> : vector<8xf32>
    %67 = vector.multi_reduction <add>, %63, %cst_81 [0] : vector<64x8xf32> to vector<8xf32>
    %68 = vector.shape_cast %67 : vector<8xf32> to vector<1x8xf32>
    %69 = arith.mulf %63, %63 : vector<64x8xf32>
    %cst_82 = arith.constant dense<0.000000e+00> : vector<8xf32>
    %70 = vector.multi_reduction <add>, %69, %cst_82 [0] : vector<64x8xf32> to vector<8xf32>
    %71 = vector.shape_cast %70 : vector<8xf32> to vector<1x8xf32>
    %72 = tpu.concatenate %68, %71 in 0 : vector<1x8xf32>, vector<1x8xf32> -> vector<2x8xf32>
    %c0_83 = arith.constant 0 : index
    %c0_84 = arith.constant 0 : index
    %c0_85 = arith.constant 0 : index
    %73 = vector.load %arg7[%c0_83, %c0_84, %c0_85] : memref<1x2x8xf32, #tpu.memory_space<vmem>>, vector<1x2x8xf32>
    %74 = vector.shape_cast %73 : vector<1x2x8xf32> to vector<2x8xf32>
    %75 = vector.shape_cast %72 : vector<2x8xf32> to vector<1x2x8xf32>
    tpu.vector_store %arg7[%c0_83, %c0_84, %c0_85], %75 {strides = array<i32>} : memref<1x2x8xf32, #tpu.memory_space<vmem>>, vector<1x2x8xf32>,
    return
  }
  func.func @transform_0(%arg0: i32) -> (i32, i32, i32, i32) {
    %c0_i32 = arith.constant 0 : i32
    %c0_i32_0 = arith.constant 0 : i32
    %c0_i32_1 = arith.constant 0 : i32
    %c0_i32_2 = arith.constant 0 : i32
    return %arg0, %c0_i32, %c0_i32_0, %c0_i32_1 : i32, i32, i32, i32
  }
  func.func @transform_1(%arg0: i32) -> (i32, i32, i32, i32) {
    %c0_i32 = arith.constant 0 : i32
    %c0_i32_0 = arith.constant 0 : i32
    %c0_i32_1 = arith.constant 0 : i32
    %c0_i32_2 = arith.constant 0 : i32
    return %arg0, %c0_i32, %c0_i32_0, %c0_i32_1 : i32, i32, i32, i32
  }
  func.func @transform_2(%arg0: i32) -> (i32, i32, i32, i32) {
    %c0_i32 = arith.constant 0 : i32
    %c0_i32_0 = arith.constant 0 : i32
    %c0_i32_1 = arith.constant 0 : i32
    %c0_i32_2 = arith.constant 0 : i32
    return %arg0, %c0_i32, %c0_i32_0, %c0_i32_1 : i32, i32, i32, i32
  }
  func.func @transform_3(%arg0: i32) -> (i32, i32, i32, i32) {
    %c0_i32 = arith.constant 0 : i32
    %c0_i32_0 = arith.constant 0 : i32
    %c0_i32_1 = arith.constant 0 : i32
    %c0_i32_2 = arith.constant 0 : i32
    return %arg0, %c0_i32, %c0_i32_0, %c0_i32_1 : i32, i32, i32, i32
  }
  func.func @transform_4(%arg0: i32) -> (i32, i32, i32, i32) {
    %c0_i32 = arith.constant 0 : i32
    %c0_i32_0 = arith.constant 0 : i32
    %c0_i32_1 = arith.constant 0 : i32
    %c0_i32_2 = arith.constant 0 : i32
    %c0_i32_3 = arith.constant 0 : i32
    return %c0_i32, %c0_i32_0, %c0_i32_1, %c0_i32_2 : i32, i32, i32, i32
  }
  func.func @transform_5(%arg0: i32) -> (i32, i32, i32) {
    %c0_i32 = arith.constant 0 : i32
    %c0_i32_0 = arith.constant 0 : i32
    %c0_i32_1 = arith.constant 0 : i32
    return %arg0, %c0_i32, %c0_i32_0 : i32, i32, i32
  }
  func.func @transform_6(%arg0: i32) -> (i32, i32, i32) {
    %c0_i32 = arith.constant 0 : i32
    %c0_i32_0 = arith.constant 0 : i32
    %c0_i32_1 = arith.constant 0 : i32
    return %arg0, %c0_i32, %c0_i32_0 : i32, i32, i32
  }
}

module attributes {stable_mosaic.version = 11 : i64} {
  func.func @_up_fused_kernel(%arg0: i32, %arg1: memref<1x8x64xf32, #tpu.memory_space<vmem>>, %arg2: memref<1x64xf32, #tpu.memory_space<vmem>>, %arg3: memref<1x64xf32, #tpu.memory_space<vmem>>, %arg4: memref<18x8xf32, #tpu.memory_space<vmem>>, %arg5: memref<3x64x64xbf16, #tpu.memory_space<vmem>>, %arg6: memref<1x16x64xf32, #tpu.memory_space<vmem>>, %arg7: memref<1x2x64xf32, #tpu.memory_space<vmem>>) attributes {dimension_semantics = [#tpu.dimension_semantics<parallel>], iteration_bounds = array<i64: 2>, scalar_prefetch = 0 : i64, scratch_operands = 0 : i64, tpu.core_type = #tpu.core_type<tc>, window_params = [{transform_indices = @transform_0, window_bounds = array<i64: 1, 8, 64>}, {pipeline_mode = #tpu.pipeline_mode<synchronous>, transform_indices = @transform_1, window_bounds = array<i64: 1, 64>}, {pipeline_mode = #tpu.pipeline_mode<synchronous>, transform_indices = @transform_2, window_bounds = array<i64: 1, 64>}, {pipeline_mode = #tpu.pipeline_mode<synchronous>, transform_indices = @transform_3, window_bounds = array<i64: 18, 8>}, {pipeline_mode = #tpu.pipeline_mode<synchronous>, transform_indices = @transform_4, window_bounds = array<i64: 3, 64, 64>}, {transform_indices = @transform_5, window_bounds = array<i64: 1, 16, 64>}, {transform_indices = @transform_6, window_bounds = array<i64: 1, 2, 64>}]} {
    %c0 = arith.constant 0 : index
    %c0_0 = arith.constant 0 : index
    %c0_1 = arith.constant 0 : index
    %0 = vector.load %arg1[%c0, %c0_0, %c0_1] : memref<1x8x64xf32, #tpu.memory_space<vmem>>, vector<1x8x64xf32>
    %1 = vector.shape_cast %0 : vector<1x8x64xf32> to vector<8x64xf32>
    %c0_2 = arith.constant 0 : index
    %c0_3 = arith.constant 0 : index
    %2 = vector.load %arg2[%c0_2, %c0_3] : memref<1x64xf32, #tpu.memory_space<vmem>>, vector<1x64xf32>
    %3 = vector.broadcast %2 : vector<1x64xf32> to vector<8x64xf32>
    %4 = arith.mulf %1, %3 : vector<8x64xf32>
    %c0_4 = arith.constant 0 : index
    %c0_5 = arith.constant 0 : index
    %5 = vector.load %arg3[%c0_4, %c0_5] : memref<1x64xf32, #tpu.memory_space<vmem>>, vector<1x64xf32>
    %6 = vector.broadcast %5 : vector<1x64xf32> to vector<8x64xf32>
    %7 = arith.addf %4, %6 : vector<8x64xf32>
    %cst = arith.constant 0.000000e+00 : f32
    %8 = vector.broadcast %cst : f32 to vector<8x64xf32>
    %9 = arith.subf %8, %7 : vector<8x64xf32>
    %10 = math.exp %9 : vector<8x64xf32>
    %cst_6 = arith.constant 1.000000e+00 : f32
    %11 = vector.broadcast %cst_6 : f32 to vector<8x64xf32>
    %12 = arith.addf %11, %10 : vector<8x64xf32>
    %13 = tpu.reciprocal %12 {approx = true} : vector<8x64xf32> -> vector<8x64xf32>
    %14 = arith.mulf %7, %13 : vector<8x64xf32>
    %cst_7 = arith.constant 2.000000e+00 : f32
    %15 = vector.broadcast %cst_7 : f32 to vector<8x64xf32>
    %16 = arith.mulf %14, %15 : vector<8x64xf32>
    %c0_8 = arith.constant 0 : index
    %c0_9 = arith.constant 0 : index
    %17 = vector.load %arg4[%c0_8, %c0_9] : memref<18x8xf32, #tpu.memory_space<vmem>>, vector<18x8xf32>
    %cst_10 = arith.constant dense<0.000000e+00> : vector<18x64xf32>
    %18 = tpu.matmul %17, %16, %cst_10 {dimension_numbers = #tpu.dot_dimension_numbers<[1], [0], [0], [1], [0, 0, 1, 1], [], []>} : vector<18x8xf32>, vector<8x64xf32>, vector<18x64xf32> -> vector<18x64xf32>
    %cst_11 = arith.constant 0.000000e+00 : f32
    %19 = vector.broadcast %cst_11 : f32 to vector<16x64xf32>
    %20 = vector.extract_strided_slice %18 {offsets = [0, 0], sizes = [16, 64], strides = [1, 1]} : vector<18x64xf32> to vector<16x64xf32>
    %21 = arith.truncf %20 : vector<16x64xf32> to vector<16x64xbf16>
    %c0_12 = arith.constant 0 : index
    %c0_13 = arith.constant 0 : index
    %c0_14 = arith.constant 0 : index
    %22 = vector.load %arg5[%c0_12, %c0_13, %c0_14] : memref<3x64x64xbf16, #tpu.memory_space<vmem>>, vector<1x64x64xbf16>
    %23 = vector.shape_cast %22 : vector<1x64x64xbf16> to vector<64x64xbf16>
    %cst_15 = arith.constant dense<0.000000e+00> : vector<16x64xf32>
    %24 = tpu.matmul %21, %23, %cst_15 {dimension_numbers = #tpu.dot_dimension_numbers<[1], [0], [0], [1], [0, 0, 1, 1], [], []>} : vector<16x64xbf16>, vector<64x64xbf16>, vector<16x64xf32> -> vector<16x64xf32>
    %25 = arith.addf %19, %24 : vector<16x64xf32>
    %26 = vector.extract_strided_slice %18 {offsets = [1, 0], sizes = [16, 64], strides = [1, 1]} : vector<18x64xf32> to vector<16x64xf32>
    %27 = arith.truncf %26 : vector<16x64xf32> to vector<16x64xbf16>
    %c1 = arith.constant 1 : index
    %c0_16 = arith.constant 0 : index
    %c0_17 = arith.constant 0 : index
    %28 = vector.load %arg5[%c1, %c0_16, %c0_17] : memref<3x64x64xbf16, #tpu.memory_space<vmem>>, vector<1x64x64xbf16>
    %29 = vector.shape_cast %28 : vector<1x64x64xbf16> to vector<64x64xbf16>
    %cst_18 = arith.constant dense<0.000000e+00> : vector<16x64xf32>
    %30 = tpu.matmul %27, %29, %cst_18 {dimension_numbers = #tpu.dot_dimension_numbers<[1], [0], [0], [1], [0, 0, 1, 1], [], []>} : vector<16x64xbf16>, vector<64x64xbf16>, vector<16x64xf32> -> vector<16x64xf32>
    %31 = arith.addf %25, %30 : vector<16x64xf32>
    %32 = vector.extract_strided_slice %18 {offsets = [2, 0], sizes = [16, 64], strides = [1, 1]} : vector<18x64xf32> to vector<16x64xf32>
    %33 = arith.truncf %32 : vector<16x64xf32> to vector<16x64xbf16>
    %c2 = arith.constant 2 : index
    %c0_19 = arith.constant 0 : index
    %c0_20 = arith.constant 0 : index
    %34 = vector.load %arg5[%c2, %c0_19, %c0_20] : memref<3x64x64xbf16, #tpu.memory_space<vmem>>, vector<1x64x64xbf16>
    %35 = vector.shape_cast %34 : vector<1x64x64xbf16> to vector<64x64xbf16>
    %cst_21 = arith.constant dense<0.000000e+00> : vector<16x64xf32>
    %36 = tpu.matmul %33, %35, %cst_21 {dimension_numbers = #tpu.dot_dimension_numbers<[1], [0], [0], [1], [0, 0, 1, 1], [], []>} : vector<16x64xbf16>, vector<64x64xbf16>, vector<16x64xf32> -> vector<16x64xf32>
    %37 = arith.addf %31, %36 : vector<16x64xf32>
    %c0_22 = arith.constant 0 : index
    %c0_23 = arith.constant 0 : index
    %c0_24 = arith.constant 0 : index
    %38 = vector.load %arg6[%c0_22, %c0_23, %c0_24] : memref<1x16x64xf32, #tpu.memory_space<vmem>>, vector<1x16x64xf32>
    %39 = vector.shape_cast %38 : vector<1x16x64xf32> to vector<16x64xf32>
    %40 = vector.shape_cast %37 : vector<16x64xf32> to vector<1x16x64xf32>
    tpu.vector_store %arg6[%c0_22, %c0_23, %c0_24], %40 {strides = array<i32>} : memref<1x16x64xf32, #tpu.memory_space<vmem>>, vector<1x16x64xf32>,
    %cst_25 = arith.constant dense<0.000000e+00> : vector<64xf32>
    %41 = vector.multi_reduction <add>, %37, %cst_25 [0] : vector<16x64xf32> to vector<64xf32>
    %42 = vector.shape_cast %41 : vector<64xf32> to vector<1x64xf32>
    %43 = arith.mulf %37, %37 : vector<16x64xf32>
    %cst_26 = arith.constant dense<0.000000e+00> : vector<64xf32>
    %44 = vector.multi_reduction <add>, %43, %cst_26 [0] : vector<16x64xf32> to vector<64xf32>
    %45 = vector.shape_cast %44 : vector<64xf32> to vector<1x64xf32>
    %46 = tpu.concatenate %42, %45 in 0 : vector<1x64xf32>, vector<1x64xf32> -> vector<2x64xf32>
    %c0_27 = arith.constant 0 : index
    %c0_28 = arith.constant 0 : index
    %c0_29 = arith.constant 0 : index
    %47 = vector.load %arg7[%c0_27, %c0_28, %c0_29] : memref<1x2x64xf32, #tpu.memory_space<vmem>>, vector<1x2x64xf32>
    %48 = vector.shape_cast %47 : vector<1x2x64xf32> to vector<2x64xf32>
    %49 = vector.shape_cast %46 : vector<2x64xf32> to vector<1x2x64xf32>
    tpu.vector_store %arg7[%c0_27, %c0_28, %c0_29], %49 {strides = array<i32>} : memref<1x2x64xf32, #tpu.memory_space<vmem>>, vector<1x2x64xf32>,
    return
  }
  func.func @transform_0(%arg0: i32) -> (i32, i32, i32) {
    %c0_i32 = arith.constant 0 : i32
    %c0_i32_0 = arith.constant 0 : i32
    %c0_i32_1 = arith.constant 0 : i32
    return %arg0, %c0_i32, %c0_i32_0 : i32, i32, i32
  }
  func.func @transform_1(%arg0: i32) -> (i32, i32) {
    %c0_i32 = arith.constant 0 : i32
    %c0_i32_0 = arith.constant 0 : i32
    %c0_i32_1 = arith.constant 0 : i32
    return %c0_i32, %c0_i32_0 : i32, i32
  }
  func.func @transform_2(%arg0: i32) -> (i32, i32) {
    %c0_i32 = arith.constant 0 : i32
    %c0_i32_0 = arith.constant 0 : i32
    %c0_i32_1 = arith.constant 0 : i32
    return %c0_i32, %c0_i32_0 : i32, i32
  }
  func.func @transform_3(%arg0: i32) -> (i32, i32) {
    %c0_i32 = arith.constant 0 : i32
    %c0_i32_0 = arith.constant 0 : i32
    %c0_i32_1 = arith.constant 0 : i32
    return %c0_i32, %c0_i32_0 : i32, i32
  }
  func.func @transform_4(%arg0: i32) -> (i32, i32, i32) {
    %c0_i32 = arith.constant 0 : i32
    %c0_i32_0 = arith.constant 0 : i32
    %c0_i32_1 = arith.constant 0 : i32
    %c0_i32_2 = arith.constant 0 : i32
    return %c0_i32, %c0_i32_0, %c0_i32_1 : i32, i32, i32
  }
  func.func @transform_5(%arg0: i32) -> (i32, i32, i32) {
    %c0_i32 = arith.constant 0 : i32
    %c0_i32_0 = arith.constant 0 : i32
    %c0_i32_1 = arith.constant 0 : i32
    return %arg0, %c0_i32, %c0_i32_0 : i32, i32, i32
  }
  func.func @transform_6(%arg0: i32) -> (i32, i32, i32) {
    %c0_i32 = arith.constant 0 : i32
    %c0_i32_0 = arith.constant 0 : i32
    %c0_i32_1 = arith.constant 0 : i32
    return %arg0, %c0_i32, %c0_i32_0 : i32, i32, i32
  }
}

module attributes {stable_mosaic.version = 11 : i64} {
  func.func @_bn_silu_kernel(%arg0: i32, %arg1: memref<1x16x64xf32, #tpu.memory_space<vmem>>, %arg2: memref<1x64xf32, #tpu.memory_space<vmem>>, %arg3: memref<1x64xf32, #tpu.memory_space<vmem>>, %arg4: memref<1x16x64xf32, #tpu.memory_space<vmem>>) attributes {dimension_semantics = [#tpu.dimension_semantics<parallel>], iteration_bounds = array<i64: 2>, scalar_prefetch = 0 : i64, scratch_operands = 0 : i64, tpu.core_type = #tpu.core_type<tc>, window_params = [{transform_indices = @transform_0, window_bounds = array<i64: 1, 16, 64>}, {pipeline_mode = #tpu.pipeline_mode<synchronous>, transform_indices = @transform_1, window_bounds = array<i64: 1, 64>}, {pipeline_mode = #tpu.pipeline_mode<synchronous>, transform_indices = @transform_2, window_bounds = array<i64: 1, 64>}, {transform_indices = @transform_3, window_bounds = array<i64: 1, 16, 64>}]} {
    %c0 = arith.constant 0 : index
    %c0_0 = arith.constant 0 : index
    %c0_1 = arith.constant 0 : index
    %0 = vector.load %arg1[%c0, %c0_0, %c0_1] : memref<1x16x64xf32, #tpu.memory_space<vmem>>, vector<1x16x64xf32>
    %1 = vector.shape_cast %0 : vector<1x16x64xf32> to vector<16x64xf32>
    %c0_2 = arith.constant 0 : index
    %c0_3 = arith.constant 0 : index
    %2 = vector.load %arg2[%c0_2, %c0_3] : memref<1x64xf32, #tpu.memory_space<vmem>>, vector<1x64xf32>
    %3 = vector.broadcast %2 : vector<1x64xf32> to vector<16x64xf32>
    %4 = arith.mulf %1, %3 : vector<16x64xf32>
    %c0_4 = arith.constant 0 : index
    %c0_5 = arith.constant 0 : index
    %5 = vector.load %arg3[%c0_4, %c0_5] : memref<1x64xf32, #tpu.memory_space<vmem>>, vector<1x64xf32>
    %6 = vector.broadcast %5 : vector<1x64xf32> to vector<16x64xf32>
    %7 = arith.addf %4, %6 : vector<16x64xf32>
    %cst = arith.constant 0.000000e+00 : f32
    %8 = vector.broadcast %cst : f32 to vector<16x64xf32>
    %9 = arith.subf %8, %7 : vector<16x64xf32>
    %10 = math.exp %9 : vector<16x64xf32>
    %cst_6 = arith.constant 1.000000e+00 : f32
    %11 = vector.broadcast %cst_6 : f32 to vector<16x64xf32>
    %12 = arith.addf %11, %10 : vector<16x64xf32>
    %13 = tpu.reciprocal %12 {approx = true} : vector<16x64xf32> -> vector<16x64xf32>
    %14 = arith.mulf %7, %13 : vector<16x64xf32>
    %c0_7 = arith.constant 0 : index
    %c0_8 = arith.constant 0 : index
    %c0_9 = arith.constant 0 : index
    %15 = vector.load %arg4[%c0_7, %c0_8, %c0_9] : memref<1x16x64xf32, #tpu.memory_space<vmem>>, vector<1x16x64xf32>
    %16 = vector.shape_cast %15 : vector<1x16x64xf32> to vector<16x64xf32>
    %17 = vector.shape_cast %14 : vector<16x64xf32> to vector<1x16x64xf32>
    tpu.vector_store %arg4[%c0_7, %c0_8, %c0_9], %17 {strides = array<i32>} : memref<1x16x64xf32, #tpu.memory_space<vmem>>, vector<1x16x64xf32>,
    return
  }
  func.func @transform_0(%arg0: i32) -> (i32, i32, i32) {
    %c0_i32 = arith.constant 0 : i32
    %c0_i32_0 = arith.constant 0 : i32
    %c0_i32_1 = arith.constant 0 : i32
    return %arg0, %c0_i32, %c0_i32_0 : i32, i32, i32
  }
  func.func @transform_1(%arg0: i32) -> (i32, i32) {
    %c0_i32 = arith.constant 0 : i32
    %c0_i32_0 = arith.constant 0 : i32
    %c0_i32_1 = arith.constant 0 : i32
    return %c0_i32, %c0_i32_0 : i32, i32
  }
  func.func @transform_2(%arg0: i32) -> (i32, i32) {
    %c0_i32 = arith.constant 0 : i32
    %c0_i32_0 = arith.constant 0 : i32
    %c0_i32_1 = arith.constant 0 : i32
    return %c0_i32, %c0_i32_0 : i32, i32
  }
  func.func @transform_3(%arg0: i32) -> (i32, i32, i32) {
    %c0_i32 = arith.constant 0 : i32
    %c0_i32_0 = arith.constant 0 : i32
    %c0_i32_1 = arith.constant 0 : i32
    return %arg0, %c0_i32, %c0_i32_0 : i32, i32, i32
  }
}

</mosaic_0001>

<bundles_post_ra>
// kernel: tile.29
= control target key start
LH: loop header
LB: loop body
LE: loop exit
PB: predicated region body
PF: predicated region fallthrough
CT: control target
= control target key end

     0   :  { %s67_s10 = smov 56   ;;  %s68_s11 = smov 40   ;;  %vm3_vm0 = vcmask 64512   ;;  %vm9_vm1 = vcmask 523712   ;;  %vm15_vm2 = vcmask 458112   ;;  %vm21_vm3 = vcmask 392512   ;;  %s111_s0 = inlined_call_operand.vmem [shape: f32[8,8], index: 0, kind: input, shape index: {}]   ;;  %s112_s1 = inlined_call_operand.vmem [shape: f32[1,64], index: 1, kind: output, shape index: {}]  }
   0x1   :  { %v53_v0 = vld [vmem:[%s111_s0 + $0x7] sm:$0x1]   ;;  %v55_v1 = vld [vmem:[%s111_s0 + $0x5] sm:$0x1]   ;;  %v57_v2 = vld [vmem:[%s111_s0 + $0x3] sm:$0x1]  }
   0x2   :  { %7 = vrot.lane.b32.xlu0 %v53_v0, %s67_s10  ;;  %19 = vrot.lane.b32.xlu1 %v55_v1, %s68_s11  ;;  %s69_s14 = smov 24   ;;  %v54_v3 = vld [vmem:[%s111_s0 + $0x6] sm:$0x1]   ;;  %v56_v4 = vld [vmem:[%s111_s0 + $0x4] sm:$0x1]   ;;  %s70_s21 = smov 48  }
   0x3   :  { %31 = vrot.lane.b32.xlu2 %v57_v2, %s69_s14  ;;  %v58_v5 = vld [vmem:[%s111_s0 + $0x2] sm:$0x1]   ;;  %s71_s22 = smov 32   ;;  %s72_s23 = smov 16   ;;  %v59_v6 = vld [vmem:[%s111_s0 + $0x1] sm:$0x1]  }
   0x4   :  { %s73_s26 = smov 8   ;;  %v2_v7 = vld [vmem:[%s111_s0] sm:$0x1]   ;;  %vm27_vm4 = vcmask 326912   ;;  %vm33_vm5 = vcmask 261312   ;;  %vm39_vm6 = vcmask 195712  }
   0x5   :  { %4 = vst.msk [vmem:[#allocation0] sm:$0x1] %vm3_vm0, %v2_v7   ;;  %vm45_vm7 = vcmask 130112  }
   0xa   :  { %13 = vrot.lane.b32.xlu0 %v54_v3, %s70_s21  ;;  %25 = vrot.lane.b32.xlu1 %v56_v4, %s71_s22 }
   0xb   :  { %37 = vrot.lane.b32.xlu2 %v58_v5, %s72_s23 }
  0x12   :  { %43 = vrot.lane.b32.xlu0 %v59_v6, %s73_s26 }
  0x5d   :  { %v32_v8 = vpop.permute.xlu2 %31  }
  0x65   :  { %v38_v9 = vpop.permute.xlu2 %37  }
  0x74   :  { %v8_v10 = vpop.permute.xlu0 %7   ;;  %v20_v11 = vpop.permute.xlu1 %19  }
  0x75   :  { %10 = vst.msk [vmem:[#allocation0] sm:$0x1] %vm9_vm1, %v8_v10  }
  0x7c   :  { %v14_v12 = vpop.permute.xlu0 %13   ;;  %v26_v13 = vpop.permute.xlu1 %25  }
  0x7d   :  { %16 = vst.msk [vmem:[#allocation0] sm:$0x1] %vm15_vm2, %v14_v12  }
  0x7e   :  { %22 = vst.msk [vmem:[#allocation0] sm:$0x1] %vm21_vm3, %v20_v11  }
  0x7f   :  { %28 = vst.msk [vmem:[#allocation0] sm:$0x1] %vm27_vm4, %v26_v13  }
  0x80   :  { %34 = vst.msk [vmem:[#allocation0] sm:$0x1] %vm33_vm5, %v32_v8  }
  0x81   :  { %40 = vst.msk [vmem:[#allocation0] sm:$0x1] %vm39_vm6, %v38_v9  }
  0x84   :  { %v44_v14 = vpop.permute.xlu0 %43  }
  0x85   :  { %46 = vst.msk [vmem:[#allocation0] sm:$0x1] %vm45_vm7, %v44_v14  }
  0x8c   :  { %v49_v15 = vld [vmem:[#allocation0] sm:$0x1] }
  0x8d   :  { %52 = vst [vmem:[%s112_s1] sm:$0x1] %v49_v15 }

// kernel: tile.28
= control target key start
LH: loop header
LB: loop body
LE: loop exit
PB: predicated region body
PF: predicated region fallthrough
CT: control target
= control target key end

     0   :  { %s22_s0 = inlined_call_operand.vmem [shape: f32[8], index: 0, kind: input, shape index: {}]   ;;  %s23_s1 = inlined_call_operand.vmem [shape: f32[8,8], index: 1, kind: output, shape index: {}]  }
   0x1   :  { %v4_v0 = vld [vmem:[%s22_s0] ss:$0 sm:$0xff] }
   0x2   :  { %5 = vst [vmem:[%s23_s1] sm:$0xff] %v4_v0 }

// kernel: unet_level_forward.4
= control target key start
LH: loop header
LB: loop body
LE: loop exit
PB: predicated region body
PF: predicated region fallthrough
CT: control target
= control target key end

     0   :  { %s753_s21 = smov 0   ;;  %s838_s0 = inlined_call_operand.vmem [shape: f32[2,8,64], index: 0, kind: input, shape index: {}]   ;;  %s839_s1 = inlined_call_operand.vmem [shape: f32[1,64], index: 1, kind: input, shape index: {}]   ;;  %s840_s2 = inlined_call_operand.vmem [shape: f32[1,64], index: 2, kind: input, shape index: {}]   ;;  %s841_s3 = inlined_call_operand.vmem [shape: f32[18,8], index: 3, kind: input, shape index: {}]   ;;  %s842_s4 = inlined_call_operand.vmem [shape: bf16[3,64,64], index: 4, kind: input, shape index: {}]   ;;  %s843_s5 = inlined_call_operand.vmem [shape: f32[2,16,64], index: 5, kind: output, shape index: {0}]   ;;  %s844_s6 = inlined_call_operand.vmem [shape: f32[2,2,64], index: 6, kind: output, shape index: {1}]  }
   0x1 LB: > { %s602_s22 = sadd.s32 4294967295, %s716_s21   ;;  %p606_p0 = scmp.ge.s32.totalorder %s716_s21, 1  ;;  %s716_s21 = sphi %s753_s21, %s17_s21  }
   0x2   : > { %p214_p1 = scmp.lt.s32.totalorder %s716_s21, 3 }
   0x4   : > { %p215_p2 = pnand %p606_p0, %p214_p1 }
   0x5   : > { %p247_p3 = scmp.lt.s32.totalorder (!%p215_p2), %s602_s22, 1 }
   0x6   : > { %218 = sbr.rel (%p215_p2) target bundleno = 352 (0x160), region = 40 }
   0xb   : > { %s846_s22 = smov (!%p247_p3, %s602_s22), 1  ;;  %v704_v0 = vld [vmem:[%s839_s1] ss:$0 sm:$0xff]  ;;  %v687_v7 = vld [vmem:[%s842_s4 + $0x18] sm:$0xff]  ;;  %vm282_vm0 = vcmask 64512   ;;  %v280_v14 = vld [vmem:[%s841_s3 + $0x8] sm:$0xff] }
   0xc   : > { %s607_s25 = sshll.u32 %s846_s22, 3  ;;  %v705_v1 = vld [vmem:[%s840_s2] ss:$0 sm:$0xff]  ;;  %422 = vmatpush.bf16.msra.mxu2 %v687_v7  ;;  %v281_v15 = vld [vmem:[%s841_s3 + $0x10] sm:$0x3]  ;;  %v685_v17 = vld [vmem:[%s842_s4 + $0x8] sm:$0xff] }
   0xd   : > { %s250_s28 = scalar_lea.vmem %s838_s0, %s607_s25  ;;  %v279_v13 = vld [vmem:[%s841_s3] sm:$0xff]  ;;  %v686_v16 = vld [vmem:[%s842_s4 + $0x10] sm:$0xff]  ;;  %v695_v18 = vld [vmem:[%s842_s4 + $0x58] sm:$0xff]  ;;  %vm374_vm1 = vcmask 523264   ;;  %vm443_vm2 = vcmask 1046528   ;;  %s683_s15 = sshll.u32 %s846_s22, 4 }
   0xe   : > { %v261_v2 = vld [vmem:[%s250_s28] sm:$0xff]  ;;  %478 = vmatpush.bf16.msra.mxu3 %v695_v18  ;;  %v691_v20 = vld [vmem:[%s842_s4 + $0x38] sm:$0xff]  ;;  %v694_v21 = vld [vmem:[%s842_s4 + $0x50] sm:$0xff]  ;;  %vm337_vm3 = vsmask.f32 7424  ;;  %s255_s18 = scalar_lea.vmem %s843_s5, %s683_s15  ;;  %s610_s19 = sshll.u32 %s846_s22, 1 }
   0xf   : > { %v266_v3 = vmul.f32 %v704_v0, %v261_v2  ;;  %v684_v19 = vld [vmem:[%s842_s4] sm:$0xff]  ;;  %382 = vmatpush.bf16.msra.mxu1 %v691_v20  ;;  %v690_v22 = vld [vmem:[%s842_s4 + $0x30] sm:$0xff]  ;;  %v693_v23 = vld [vmem:[%s842_s4 + $0x48] sm:$0xff]  ;;  %vm512_vm4 = vcmask 1040384   ;;  %s259_s24 = scalar_lea.vmem %s844_s6, %s610_s19  ;;  %vm514_vm5 = vcmask 517120  }
  0x10   : > { %423 = vmatpush.bf16.msra.mxu2 %v686_v16  ;;  %v689_v24 = vld [vmem:[%s842_s4 + $0x28] sm:$0xff]  ;;  %v692_v25 = vld [vmem:[%s842_s4 + $0x40] sm:$0xff] }
  0x11   : > { %v271_v4 = vadd.f32 %v705_v1, %v266_v3  ;;  %v688_v26 = vld [vmem:[%s842_s4 + $0x20] sm:$0xff] }
  0x12   : > { %479 = vmatpush.bf16.msra.mxu3 %v694_v21 }
  0x13   : > { %v272_v5 = vsub.f32 0.0, %v271_v4  ;;  %383 = vmatpush.bf16.msra.mxu1 %v690_v22 }
  0x14   : > { %424 = vmatpush.bf16.msra.mxu2 %v685_v17 }
  0x15   : > { %v273_v6 = vmul.f32 1.442695, %v272_v5 }
  0x16   : > { %480 = vmatpush.bf16.msra.mxu3 %v693_v23 }
  0x17   : > { %706 = vpow2.f32 %v273_v6  ;;  %384 = vmatpush.bf16.msra.mxu1 %v689_v24 }
  0x18   : > { %425 = vmatpush.bf16.msra.mxu2 %v684_v19 }
  0x1a   : > { %481 = vmatpush.bf16.msra.mxu3 %v692_v25 }
  0x1b   : > { %385 = vmatpush.bf16.msra.mxu1 %v688_v26 }
  0x1d   : > { %v707_v8 = vpop.eup %706 }
  0x1e   : > { %v275_v9 = vadd.f32 1.0, %v707_v8 }
  0x20   : > { %708 = vrcp.f32 %v275_v9 }
  0x26   : > { %v709_v10 = vpop.eup %708 }
  0x27   : > { %v277_v11 = vmul.f32 %v709_v10, %v271_v4 }
  0x29   : > { %v278_v12 = vmul.f32 2.0, %v277_v11 }
  0x2b   : > { %307 = vmatpush.msra.mxu0 %v278_v12 }
  0x2c   : > { %611 = vmatmul.msk.f32.vlgmr.msra.gmra.mxu0 %vm282_vm0, %v279_v13 }
  0x34   : > { %612 = vmatmul.msk.f32.gmra.mxu0 %vm282_vm0, %v280_v14 }
  0x3c   : > { %613 = vmatmul.msk.f32.gmra.mxu0 %vm282_vm0, %v281_v15 }
  0xa9   : > { %v309_v27 = vpop.f32.mrf.mxu0 }
  0xb1   : > { %v312_v28 = vpop.f32.mrf.mxu0 }
  0xb2   : > { %v318_v29 = vpack.c.bf16 %v312_v28, %v309_v27 }
  0xb4   : > { %655 = vmatmul.msk.bf16.vlgmr.msra.gmra.mxu2 %vm374_vm1, %v318_v29  ;;  %v341_v30 = vshll.u32 %v318_v29, 16  ;;  %v444_v36 = vrot.slane %v318_v29, 1  ;;  %v339_v37 = vshrl.u32 %v318_v29, 16 }
  0xb6   : > { %v343_v33 = vrot.slane %v341_v30, 1 }
  0xb8   : > { %v344_v40 = vor.u32 %v343_v33, %v339_v37 }
  0xb9   : > { %v315_v31 = vpop.f32.mrf.mxu0 }
  0xba   : > { %v327_v32 = vpack.c.bf16 %v315_v31, %v315_v31 }
  0xbc   : > { %v346_v34 = vshll.u32 %v327_v32, 16  ;;  %v445_v35 = vrot.slane %v327_v32, 1 }
  0xbe   : > { %v348_v38 = vrot.slane %v346_v34, 1  ;;  %v446_v39 = vsel %vm443_vm2, %v444_v36, %v445_v35 }
  0xbf   : > { %680 = vmatmul.msk.bf16.vlgmr.msra.gmra.mxu3 %vm374_vm1, %v446_v39 }
  0xc0   : > { %v349_v41 = vsel %vm337_vm3, %v344_v40, %v348_v38 }
  0xc1   : > { %638 = vmatmul.msk.bf16.vlgmr.msra.gmra.mxu1 %vm374_vm1, %v349_v41 }
 0x137   : > { %v427_v42 = vpop.f32.mrf.mxu2 }
 0x13e   : > { %v387_v43 = vpop.f32.mrf.mxu1 }
 0x13f   : > { %v428_v44 = vadd.f32 %v427_v42, %v387_v43  ;;  %v429_v48 = vpop.f32.mrf.mxu2 }
 0x142   : > { %v483_v45 = vpop.f32.mrf.mxu3 }
 0x143   : > { %v488_v46 = vadd.f32 %v483_v45, %v428_v44 }
 0x145   : > { %490 = vst.msk [vmem:[%s255_s18] sm:$0xff] %vm374_vm1, %v488_v46  ;;  %v501_v51 = vmul.f32 %v488_v46, %v488_v46  ;;  %v492_v53 = vsel %vm374_vm1, %v488_v46, 0.0 }
 0x146   : > { %v389_v47 = vpop.f32.mrf.mxu1 }
 0x147   : > { %v430_v49 = vadd.f32 %v429_v48, %v389_v47  ;;  %v503_v57 = vsel %vm374_vm1, %v501_v51, 0.0 }
 0x14a   : > { %v485_v50 = vpop.f32.mrf.mxu3 }
 0x14b   : > { %v489_v52 = vadd.f32 %v485_v50, %v430_v49 }
 0x14d   : > { %491 = vst.msk [vmem:[%s255_s18 + $0x8] sm:$0xff] %vm374_vm1, %v489_v52  ;;  %v493_v54 = vsel %vm374_vm1, %v489_v52, 0.0  ;;  %v502_v55 = vmul.f32 %v489_v52, %v489_v52 }
 0x14e   : > { %v494_v56 = vadd.f32 %v493_v54, %v492_v53 }
 0x14f   : > { %v504_v58 = vsel %vm374_vm1, %v502_v55, 0.0 }
 0x150   : > { %v495_v59 = vrot.slane %v494_v56, 4  ;;  %v505_v60 = vadd.f32 %v504_v58, %v503_v57 }
 0x152   : > { %v496_v61 = vadd.f32 %v495_v59, %v494_v56  ;;  %v506_v62 = vrot.slane %v505_v60, 4 }
 0x154   : > { %v497_v63 = vrot.slane %v496_v61, 2  ;;  %v507_v0 = vadd.f32 %v506_v62, %v505_v60 }
 0x156   : > { %v498_v1 = vadd.f32 %v497_v63, %v496_v61  ;;  %v508_v2 = vrot.slane %v507_v0, 2 }
 0x158   : > { %v499_v3 = vrot.slane %v498_v1, 1  ;;  %v509_v4 = vadd.f32 %v508_v2, %v507_v0 }
 0x15a   : > { %v510_v5 = vrot.slane %v509_v4, 1  ;;  %v500_v6 = vadd.f32 %v499_v3, %v498_v1 }
 0x15c   : > { %v511_v7 = vadd.f32 %v510_v5, %v509_v4 }
 0x15e   : > { %v513_v8 = vsel %vm512_vm4, %v500_v6, %v511_v7 }
 0x15f   : > { %515 = vst.msk [vmem:[%s259_s24] sm:$0x3] %vm514_vm5, %v513_v8 }
 0x160 PF: > { %s17_s21 = sadd.s32 1, %s716_s21  }
 0x161   : > { %p14_p4 = scmp.ge.s32.totalorder %s17_s21, 4  }
 0x163   :  { %16 = sbr.rel (!%p14_p4) target bundleno = 1 (0x1), region = 84 }

// kernel: tile.38
= control target key start
LH: loop header
LB: loop body
LE: loop exit
PB: predicated region body
PF: predicated region fallthrough
CT: control target
= control target key end

     0   :  { %s28_s0 = inlined_call_operand.vmem [shape: f32[4], index: 0, kind: input, shape index: {}]   ;;  %s29_s1 = inlined_call_operand.vmem [shape: f32[16,4], index: 1, kind: output, shape index: {}]  }
   0x1   :  { %v4_v0 = vld [vmem:[%s28_s0] ss:$0 sm:$0xff] }
   0x2   :  { %5 = vst [vmem:[%s29_s1] sm:$0xff] %v4_v0 }
   0x3   :  { %8 = vst [vmem:[%s29_s1 + $0x8] sm:$0xff] %v4_v0 }

// kernel: tile.39
= control target key start
LH: loop header
LB: loop body
LE: loop exit
PB: predicated region body
PF: predicated region fallthrough
CT: control target
= control target key end

     0   :  { %s131_s10 = smov 60   ;;  %s132_s11 = smov 52   ;;  %vm3_vm0 = vcmask 31744   ;;  %vm9_vm1 = vcmask 523744   ;;  %vm15_vm2 = vcmask 490944   ;;  %vm21_vm3 = vcmask 458144   ;;  %s207_s0 = inlined_call_operand.vmem [shape: f32[16,4], index: 0, kind: input, shape index: {}]   ;;  %s208_s1 = inlined_call_operand.vmem [shape: f32[1,64], index: 1, kind: output, shape index: {}]  }
   0x1   :  { %v101_v0 = vld [vmem:[%s207_s0 + $0xf] sm:$0x1]   ;;  %v103_v1 = vld [vmem:[%s207_s0 + $0xd] sm:$0x1]   ;;  %v105_v2 = vld [vmem:[%s207_s0 + $0xb] sm:$0x1]  }
   0x2   :  { %7 = vrot.lane.b32.xlu0 %v101_v0, %s131_s10  ;;  %19 = vrot.lane.b32.xlu1 %v103_v1, %s132_s11  ;;  %s133_s14 = smov 44   ;;  %v102_v3 = vld [vmem:[%s207_s0 + $0xe] sm:$0x1]   ;;  %v104_v4 = vld [vmem:[%s207_s0 + $0xc] sm:$0x1]   ;;  %s134_s19 = smov 56  }
   0x3   :  { %31 = vrot.lane.b32.xlu2 %v105_v2, %s133_s14  ;;  %s135_s20 = smov 48   ;;  %v106_v5 = vld [vmem:[%s207_s0 + $0xa] sm:$0x1]   ;;  %s136_s23 = smov 40   ;;  %v107_v6 = vld [vmem:[%s207_s0 + $0x9] sm:$0x1]  }
   0x4   :  { %v108_v7 = vld [vmem:[%s207_s0 + $0x8] sm:$0x1]   ;;  %s137_s28 = smov 36   ;;  %s138_s29 = smov 32   ;;  %v109_v8 = vld [vmem:[%s207_s0 + $0x7] sm:$0x1]  }
   0x5   :  { %s139_s3 = smov 28   ;;  %v110_v9 = vld [vmem:[%s207_s0 + $0x6] sm:$0x1]   ;;  %v111_v10 = vld [vmem:[%s207_s0 + $0x5] sm:$0x1]   ;;  %s140_s8 = smov 24  }
   0x6   :  { %s141_s9 = smov 20   ;;  %v112_v11 = vld [vmem:[%s207_s0 + $0x4] sm:$0x1]   ;;  %s142_s12 = smov 16   ;;  %v113_v12 = vld [vmem:[%s207_s0 + $0x3] sm:$0x1]  }
   0x7   :  { %v114_v13 = vld [vmem:[%s207_s0 + $0x2] sm:$0x1]   ;;  %s143_s17 = smov 12   ;;  %s144_s18 = smov 8   ;;  %v115_v14 = vld [vmem:[%s207_s0 + $0x1] sm:$0x1]  }
   0x8   :  { %s145_s21 = smov 4   ;;  %v2_v15 = vld [vmem:[%s207_s0] sm:$0x1]   ;;  %vm27_vm4 = vcmask 425344   ;;  %vm33_vm5 = vcmask 392544   ;;  %vm39_vm6 = vcmask 359744  }
   0x9   :  { %4 = vst.msk [vmem:[#allocation0] sm:$0x1] %vm3_vm0, %v2_v15   ;;  %vm45_vm7 = vcmask 326944   ;;  %vm51_vm8 = vcmask 294144   ;;  %vm57_vm9 = vcmask 261344   ;;  %vm63_vm10 = vcmask 228544  }
   0xa   :  { %13 = vrot.lane.b32.xlu0 %v102_v3, %s134_s19  ;;  %25 = vrot.lane.b32.xlu1 %v104_v4, %s135_s20  ;;  %vm69_vm11 = vcmask 195744   ;;  %vm75_vm12 = vcmask 162944   ;;  %vm81_vm13 = vcmask 130144   ;;  %vm87_vm14 = vcmask 97344  }
   0xb   :  { %37 = vrot.lane.b32.xlu2 %v106_v5, %s136_s23  ;;  %vm93_vm15 = vcmask 64544  }
  0x12   :  { %43 = vrot.lane.b32.xlu0 %v107_v6, %s137_s28  ;;  %49 = vrot.lane.b32.xlu1 %v108_v7, %s138_s29 }
  0x13   :  { %55 = vrot.lane.b32.xlu2 %v109_v8, %s139_s3 }
  0x1a   :  { %61 = vrot.lane.b32.xlu0 %v110_v9, %s140_s8  ;;  %67 = vrot.lane.b32.xlu1 %v111_v10, %s141_s9 }
  0x1b   :  { %73 = vrot.lane.b32.xlu2 %v112_v11, %s142_s12 }
  0x22   :  { %79 = vrot.lane.b32.xlu0 %v113_v12, %s143_s17  ;;  %85 = vrot.lane.b32.xlu1 %v114_v13, %s144_s18 }
  0x23   :  { %91 = vrot.lane.b32.xlu2 %v115_v14, %s145_s21 }
  0x5d   :  { %v32_v16 = vpop.permute.xlu2 %31  }
  0x65   :  { %v38_v17 = vpop.permute.xlu2 %37  }
  0x6d   :  { %v56_v18 = vpop.permute.xlu2 %55  }
  0x74   :  { %v8_v19 = vpop.permute.xlu0 %7   ;;  %v20_v20 = vpop.permute.xlu1 %19  }
  0x75   :  { %10 = vst.msk [vmem:[#allocation0] sm:$0x1] %vm9_vm1, %v8_v19   ;;  %v74_v21 = vpop.permute.xlu2 %73  }
  0x7c   :  { %v14_v22 = vpop.permute.xlu0 %13   ;;  %v26_v23 = vpop.permute.xlu1 %25  }
  0x7d   :  { %16 = vst.msk [vmem:[#allocation0] sm:$0x1] %vm15_vm2, %v14_v22   ;;  %v92_v24 = vpop.permute.xlu2 %91  }
  0x7e   :  { %22 = vst.msk [vmem:[#allocation0] sm:$0x1] %vm21_vm3, %v20_v20  }
  0x7f   :  { %28 = vst.msk [vmem:[#allocation0] sm:$0x1] %vm27_vm4, %v26_v23  }
  0x80   :  { %34 = vst.msk [vmem:[#allocation0] sm:$0x1] %vm33_vm5, %v32_v16  }
  0x81   :  { %40 = vst.msk [vmem:[#allocation0] sm:$0x1] %vm39_vm6, %v38_v17  }
  0x84   :  { %v44_v25 = vpop.permute.xlu0 %43   ;;  %v50_v26 = vpop.permute.xlu1 %49  }
  0x85   :  { %46 = vst.msk [vmem:[#allocation0] sm:$0x1] %vm45_vm7, %v44_v25  }
  0x86   :  { %52 = vst.msk [vmem:[#allocation0] sm:$0x1] %vm51_vm8, %v50_v26  }
  0x87   :  { %58 = vst.msk [vmem:[#allocation0] sm:$0x1] %vm57_vm9, %v56_v18  }
  0x8c   :  { %v62_v27 = vpop.permute.xlu0 %61   ;;  %v68_v28 = vpop.permute.xlu1 %67  }
  0x8d   :  { %64 = vst.msk [vmem:[#allocation0] sm:$0x1] %vm63_vm10, %v62_v27  }
  0x8e   :  { %70 = vst.msk [vmem:[#allocation0] sm:$0x1] %vm69_vm11, %v68_v28  }
  0x8f   :  { %76 = vst.msk [vmem:[#allocation0] sm:$0x1] %vm75_vm12, %v74_v21  }
  0x94   :  { %v80_v29 = vpop.permute.xlu0 %79   ;;  %v86_v30 = vpop.permute.xlu1 %85  }
  0x95   :  { %82 = vst.msk [vmem:[#allocation0] sm:$0x1] %vm81_vm13, %v80_v29  }
  0x96   :  { %88 = vst.msk [vmem:[#allocation0] sm:$0x1] %vm87_vm14, %v86_v30  }
  0x97   :  { %94 = vst.msk [vmem:[#allocation0] sm:$0x1] %vm93_vm15, %v92_v24  }
  0x9e   :  { %v97_v31 = vld [vmem:[#allocation0] sm:$0x1] }
  0x9f   :  { %100 = vst [vmem:[%s208_s1] sm:$0x1] %v97_v31 }

// kernel: unet_level_forward.3
= control target key start
LH: loop header
LB: loop body
LE: loop exit
PB: predicated region body
PF: predicated region fallthrough
CT: control target
= control target key end

     0   :  { %s1839_s21 = smov 0   ;;  %s2207_s0 = inlined_call_operand.vmem [shape: bf16[2,9,9,4], index: 0, kind: input, shape index: {}]   ;;  %s2208_s1 = inlined_call_operand.vmem [shape: bf16[2,9,9,4], index: 1, kind: input, shape index: {}]   ;;  %s2209_s2 = inlined_call_operand.vmem [shape: bf16[2,9,9,4], index: 2, kind: input, shape index: {}]   ;;  %s2210_s3 = inlined_call_operand.vmem [shape: bf16[2,9,9,4], index: 3, kind: input, shape index: {}]   ;;  %s2211_s4 = inlined_call_operand.vmem [shape: bf16[3,3,4,8], index: 4, kind: input, shape index: {}]   ;;  %s2212_s5 = inlined_call_operand.vmem [shape: f32[2,64,8], index: 5, kind: output, shape index: {0}]   ;;  %s2213_s6 = inlined_call_operand.vmem [shape: f32[2,2,8], index: 6, kind: output, shape index: {1}]  }
   0x1 LB: > { %s1573_s22 = sadd.s32 4294967295, %s1802_s21   ;;  %p1577_p0 = scmp.ge.s32.totalorder %s1802_s21, 1  ;;  %s1802_s21 = sphi %s1839_s21, %s17_s21  }
   0x2   : > { %p245_p1 = scmp.lt.s32.totalorder %s1802_s21, 3 }
   0x4   : > { %p246_p2 = pnand %p1577_p0, %p245_p1 }
   0x5   : > { %p294_p3 = scmp.lt.s32.totalorder (!%p246_p2), %s1573_s22, 1 }
   0x6   : > { %249 = sbr.rel (%p246_p2) target bundleno = 313 (0x139), region = 40 }
   0xb   : > { %v1585_v0 = vld [vmem:[%s2211_s4 + $0x2] sm:$0x3]  ;;  %vm376_vm0 = vcmask 1041408   ;;  %v1626_v2 = vld [vmem:[%s2211_s4 + $0x4] sm:$0x3]  ;;  %s2217_s22 = smov (!%p294_p3, %s1573_s22), 1 }
   0xc   : > { %v378_v1 = vsel %vm376_vm0, %v1585_v0, 0  ;;  %v1631_v3 = vld [vmem:[%s2211_s4 + $0x6] sm:$0x3]  ;;  %v631_v4 = vsel %vm376_vm0, %v1626_v2, 0  ;;  %v332_v6 = vld [vmem:[%s2211_s4] sm:$0x3] }
   0xd   : > { %1784 = vmatpush.bf16.msra.mxu1 %v378_v1  ;;  %1785 = vmatpush.bf16.msra.mxu2 %v378_v1  ;;  %v713_v5 = vsel %vm376_vm0, %v1631_v3, 0  ;;  %v442_v7 = vsel %vm376_vm0, %v332_v6, 0  ;;  %v1652_v8 = vld [vmem:[%s2211_s4 + $0x8] sm:$0x3]  ;;  %s1869_s9 = smul.u32 72, %s2217_s22  ;;  %vm363_vm1 = vcmask 31744  }
   0xe   : > { %1786 = vmatpush.bf16.msra.mxu3 %v378_v1  ;;  %387 = vmatpush.bf16.msra.mxu0 %v378_v1  ;;  %v795_v9 = vsel %vm376_vm0, %v1652_v8, 0  ;;  %v1686_v10 = vld [vmem:[%s2211_s4 + $0xc] sm:$0x3]  ;;  %v1715_v11 = vld [vmem:[%s2211_s4 + $0xe] sm:$0x3]  ;;  %s1759_s8 = sshll.u32 %s2217_s22, 6 }
   0xf   : > { %s1876_s12 = scalar_lea.vmem %s2208_s1, %s1869_s9  ;;  %v1673_v12 = vld [vmem:[%s2211_s4 + $0xa] sm:$0x3]  ;;  %s1891_s23 = scalar_lea.vmem %s2207_s0, %s1869_s9  ;;  %v1072_v24 = vsel %vm376_vm0, %v1686_v10, 0  ;;  %v1155_v28 = vsel %vm376_vm0, %v1715_v11, 0  ;;  %v1752_v38 = vld [vmem:[%s2211_s4 + $0x10] sm:$0x3] }
  0x10   : > { %v1592_v13 = vld [vmem:[%s1876_s12 + $0x10] sm:$0xf]  ;;  %v1765_v14 = vld [vmem:[%s1876_s12 + $0x14] sm:$0xf0]  ;;  %v1596_v15 = vld [vmem:[%s1876_s12 + $0x20] sm:$0xf]  ;;  %s1920_s28 = scalar_lea.vmem %s2209_s2, %s1869_s9  ;;  %s1933_s7 = scalar_lea.vmem %s2210_s3, %s1869_s9 }
  0x11   : > { %640 = vmatpush.bf16.msrb.mxu2 %v631_v4  ;;  %451 = vmatpush.bf16.msrb.mxu1 %v442_v7  ;;  %v1593_v16 = vor.u32 %v1765_v14, %v1592_v13  ;;  %v1766_v17 = vld [vmem:[%s1876_s12 + $0x24] sm:$0xf0]  ;;  %v1600_v18 = vld [vmem:[%s1876_s12 + $0x30] sm:$0xf]  ;;  %v1767_v19 = vld [vmem:[%s1876_s12 + $0x34] sm:$0xf0]  ;;  %s2144_s11 = scalar_lea.vmem %s2212_s5, %s1759_s8 }
  0x12   : > { %722 = vmatpush.bf16.msrb.mxu3 %v713_v5  ;;  %804 = vmatpush.bf16.msrb.mxu0 %v795_v9  ;;  %v1597_v20 = vor.u32 %v1766_v17, %v1596_v15  ;;  %v1601_v21 = vor.u32 %v1767_v19, %v1600_v18  ;;  %v1588_v22 = vld [vmem:[%s1876_s12] sm:$0xf]  ;;  %v1764_v23 = vld [vmem:[%s1876_s12 + $0x4] sm:$0xf0]  ;;  %v474_v27 = vld [vmem:[%s1891_s23 + $0x4] sm:$0x1] }
  0x13   : > { %1603 = vmatmul.msk.bf16.vlgmr.msra.gmra.mxu1 %vm363_vm1, %v1593_v16  ;;  %v1589_v25 = vor.u32 %v1764_v23, %v1588_v22  ;;  %v473_v26 = vld [vmem:[%s1891_s23] sm:$0xf]  ;;  %v989_v29 = vsel %vm376_vm0, %v1673_v12, 0  ;;  %v475_v30 = vld [vmem:[%s1891_s23 + $0x8] sm:$0xf]  ;;  %v502_v34 = vshll.u32 %v474_v27, 16 }
  0x14   : > { %1604 = vmatmul.msk.bf16.vlgmr.msra.gmra.mxu2 %vm363_vm1, %v1597_v20  ;;  %1605 = vmatmul.msk.bf16.vlgmr.msra.gmra.mxu3 %vm363_vm1, %v1601_v21  ;;  %v476_v31 = vld [vmem:[%s1891_s23 + $0xc] sm:$0x1]  ;;  %v493_v32 = vshrl.u32 %v473_v26, 16  ;;  %v496_v33 = vshll.u32 %v473_v26, 16  ;;  %v507_v35 = vshrl.u32 %v475_v30, 16  ;;  %v510_v36 = vshll.u32 %v475_v30, 16 }
  0x15   : > { %1602 = vmatmul.msk.bf16.vlgmr.msra.gmra.mxu0 %vm363_vm1, %v1589_v25  ;;  %v516_v37 = vshll.u32 %v476_v31, 16  ;;  %1081 = vmatpush.bf16.msra.mxu2 %v1072_v24  ;;  %vm489_vm2 = vsmask.f32 3328  ;;  %vm490_vm3 = vsmask.f32 7440  ;;  %v504_v44 = vrot.slane %v502_v34, 5 }
  0x16   : > { %v495_v39 = vrot.slane %v493_v32, 4  ;;  %v498_v40 = vrot.slane %v496_v33, 5  ;;  %1164 = vmatpush.bf16.msra.mxu3 %v1155_v28  ;;  %998 = vmatpush.bf16.msra.mxu1 %v989_v29  ;;  %v509_v41 = vrot.slane %v507_v35, 4  ;;  %v512_v42 = vrot.slane %v510_v36, 5  ;;  %vm1922_vm4 = vmor %vm489_vm2, %vm490_vm3  ;;  %v477_v49 = vld [vmem:[%s1891_s23 + $0x10] sm:$0xf] }
  0x17   : > { %v1349_v45 = vsel %vm376_vm0, %v1752_v38, 0  ;;  %v518_v48 = vrot.slane %v516_v37, 5  ;;  %v479_v50 = vld [vmem:[%s1891_s23 + $0x18] sm:$0xf]  ;;  %v1608_v51 = vld [vmem:[%s1891_s23] sm:$0xf] }
  0x18   : > { %v499_v43 = vor.u32 %v498_v40, %v495_v39  ;;  %v513_v47 = vor.u32 %v512_v42, %v509_v41  ;;  %1358 = vmatpush.bf16.msra.mxu0 %v1349_v45  ;;  %v521_v53 = vshrl.u32 %v477_v49, 16  ;;  %v524_v54 = vshll.u32 %v477_v49, 16  ;;  %v1760_v55 = vld [vmem:[%s1891_s23 + $0x4] sm:$0xf0]  ;;  %v1634_v60 = vld [vmem:[%s1920_s28] sm:$0xf] }
  0x19   : > { %v535_v57 = vshrl.u32 %v479_v50, 16  ;;  %v538_v58 = vshll.u32 %v479_v50, 16  ;;  %v1768_v61 = vld [vmem:[%s1920_s28 + $0x4] sm:$0xf0]  ;;  %v1655_v2 = vld [vmem:[%s1933_s7] sm:$0xf]  ;;  %v1609_v9 = vor.u32 %v1760_v55, %v1608_v51 }
  0x1a   : > { %v500_v52 = vrot.slane %v499_v43, 4  ;;  %v514_v56 = vrot.slane %v513_v47, 4  ;;  %v523_v62 = vrot.slane %v521_v53, 4  ;;  %v526_v63 = vrot.slane %v524_v54, 5  ;;  %v1772_v3 = vld [vmem:[%s1933_s7 + $0x4] sm:$0xf0] }
  0x1b   : > { %v537_v4 = vrot.slane %v535_v57, 4  ;;  %v540_v5 = vrot.slane %v538_v58, 5  ;;  %v478_v7 = vld [vmem:[%s1891_s23 + $0x14] sm:$0x1]  ;;  %v480_v8 = vld [vmem:[%s1891_s23 + $0x1c] sm:$0x1]  ;;  %v1635_v11 = vor.u32 %v1768_v61, %v1634_v60  ;;  %v1656_v12 = vor.u32 %v1772_v3, %v1655_v2 }
  0x1c   : > { %v505_v59 = vsel %vm1922_vm4, %v500_v52, %v504_v44  ;;  %v519_v0 = vsel %vm1922_vm4, %v514_v56, %v518_v48  ;;  %v527_v13 = vor.u32 %v526_v63, %v523_v62  ;;  %v530_v14 = vshll.u32 %v478_v7, 16  ;;  %v481_v21 = vld [vmem:[%s1891_s23 + $0x20] sm:$0xf]  ;;  %v483_v22 = vld [vmem:[%s1891_s23 + $0x28] sm:$0xf] }
  0x1d   : > { %v606_v1 = vunpack.c.l.b16 %v505_v59  ;;  %v607_v6 = vunpack.c.l.b16 %v519_v0  ;;  %v541_v15 = vor.u32 %v540_v5, %v537_v4  ;;  %v544_v16 = vshll.u32 %v480_v8, 16  ;;  %v1612_v29 = vld [vmem:[%s1891_s23 + $0x10] sm:$0xf]  ;;  %v1761_v30 = vld [vmem:[%s1891_s23 + $0x14] sm:$0xf0] }
  0x1e   : > { %v528_v17 = vrot.slane %v527_v13, 4  ;;  %v532_v18 = vrot.slane %v530_v14, 5  ;;  %v549_v23 = vshrl.u32 %v481_v21, 16  ;;  %v552_v24 = vshll.u32 %v481_v21, 16  ;;  %v1638_v33 = vld [vmem:[%s1920_s28 + $0x10] sm:$0xf] }
  0x1f   : > { %v614_v10 = vpack.c.b16 %v607_v6, %v606_v1  ;;  %v542_v19 = vrot.slane %v541_v15, 4  ;;  %v546_v20 = vrot.slane %v544_v16, 5  ;;  %v563_v27 = vshrl.u32 %v483_v22, 16  ;;  %v1769_v34 = vld [vmem:[%s1920_s28 + $0x14] sm:$0xf0] }
  0x20   : > { %v533_v25 = vsel %vm1922_vm4, %v528_v17, %v532_v18  ;;  %v566_v28 = vshll.u32 %v483_v22, 16  ;;  %v1659_v35 = vld [vmem:[%s1933_s7 + $0x10] sm:$0xf]  ;;  %v1773_v36 = vld [vmem:[%s1933_s7 + $0x14] sm:$0xf0]  ;;  %v551_v37 = vrot.slane %v549_v23, 4  ;;  %v1613_v43 = vor.u32 %v1761_v30, %v1612_v29 }
  0x21   : > { %v547_v26 = vsel %vm1922_vm4, %v542_v19, %v546_v20  ;;  %v608_v31 = vunpack.c.l.b16 %v533_v25  ;;  %v554_v38 = vrot.slane %v552_v24, 5  ;;  %v565_v39 = vrot.slane %v563_v27, 4  ;;  %v482_v41 = vld [vmem:[%s1891_s23 + $0x24] sm:$0x1]  ;;  %v484_v42 = vld [vmem:[%s1891_s23 + $0x2c] sm:$0x1] }
  0x22   : > { %v609_v32 = vunpack.c.l.b16 %v547_v26  ;;  %v568_v40 = vrot.slane %v566_v28, 5  ;;  %v1639_v45 = vor.u32 %v1769_v34, %v1638_v33  ;;  %v1660_v47 = vor.u32 %v1773_v36, %v1659_v35  ;;  %v485_v52 = vld [vmem:[%s1891_s23 + $0x30] sm:$0xf]  ;;  %v487_v53 = vld [vmem:[%s1891_s23 + $0x38] sm:$0xf] }
  0x23   : > { %1622 = vmatmul.msk.bf16.vlgmr.msrb.gmra.mxu1 %vm363_vm1, %v1609_v9  ;;  %v555_v48 = vor.u32 %v554_v38, %v551_v37  ;;  %v558_v49 = vshll.u32 %v482_v41, 16  ;;  %v572_v51 = vshll.u32 %v484_v42, 16  ;;  %v577_v58 = vshrl.u32 %v485_v52, 16  ;;  %v486_v4 = vld [vmem:[%s1891_s23 + $0x34] sm:$0x1] }
  0x24   : > { %1627 = vmatmul.msk.bf16.vlgmr.msrb.gmra.mxu2 %vm363_vm1, %v614_v10  ;;  %1648 = vmatmul.msk.bf16.vlgmr.msrb.gmra.mxu3 %vm363_vm1, %v1635_v11  ;;  %v615_v44 = vpack.c.b16 %v609_v32, %v608_v31  ;;  %v569_v50 = vor.u32 %v568_v40, %v565_v39  ;;  %v580_v59 = vshll.u32 %v485_v52, 16  ;;  %v591_v60 = vshrl.u32 %v487_v53, 16  ;;  %v488_v5 = vld [vmem:[%s1891_s23 + $0x3c] sm:$0x1]  ;;  %v1616_v6 = vld [vmem:[%s1891_s23 + $0x20] sm:$0xf] }
  0x25   : > { %1669 = vmatmul.msk.bf16.vlgmr.msrb.gmra.mxu0 %vm363_vm1, %v1656_v12  ;;  %v556_v54 = vrot.slane %v555_v48, 4  ;;  %v560_v55 = vrot.slane %v558_v49, 5  ;;  %v574_v57 = vrot.slane %v572_v51, 5  ;;  %v594_v61 = vshll.u32 %v487_v53, 16  ;;  %v1762_v7 = vld [vmem:[%s1891_s23 + $0x24] sm:$0xf0] }
  0x26   : > { %v570_v56 = vrot.slane %v569_v50, 4  ;;  %v579_v0 = vrot.slane %v577_v58, 4  ;;  %v582_v1 = vrot.slane %v580_v59, 5  ;;  %v593_v2 = vrot.slane %v591_v60, 4  ;;  %v1642_v10 = vld [vmem:[%s1920_s28 + $0x20] sm:$0xf] }
  0x27   : > { %v561_v62 = vsel %vm1922_vm4, %v556_v54, %v560_v55  ;;  %v596_v3 = vrot.slane %v594_v61, 5  ;;  %v1770_v11 = vld [vmem:[%s1920_s28 + $0x24] sm:$0xf0]  ;;  %v1663_v12 = vld [vmem:[%s1933_s7 + $0x20] sm:$0xf]  ;;  %v586_v15 = vshll.u32 %v486_v4, 16  ;;  %v1617_v18 = vor.u32 %v1762_v7, %v1616_v6 }
  0x28   : > { %v575_v63 = vsel %vm1922_vm4, %v570_v56, %v574_v57  ;;  %v610_v8 = vunpack.c.l.b16 %v561_v62  ;;  %v1774_v13 = vld [vmem:[%s1933_s7 + $0x24] sm:$0xf0]  ;;  %v583_v14 = vor.u32 %v582_v1, %v579_v0  ;;  %v600_v17 = vshll.u32 %v488_v5, 16  ;;  %v834_v26 = vld [vmem:[%s1920_s28] sm:$0xf] }
  0x29   : > { %v611_v9 = vunpack.c.l.b16 %v575_v63  ;;  %v597_v16 = vor.u32 %v596_v3, %v593_v2  ;;  %v1643_v20 = vor.u32 %v1770_v11, %v1642_v10  ;;  %v1664_v21 = vor.u32 %v1774_v13, %v1663_v12  ;;  %v836_v27 = vld [vmem:[%s1920_s28 + $0x8] sm:$0xf]  ;;  %v1738_v29 = vld [vmem:[%s1891_s23 + $0x10] sm:$0xf]  ;;  %v1763_v41 = vld [vmem:[%s1891_s23 + $0x34] sm:$0xf0] }
  0x2a   : > { %v584_v22 = vrot.slane %v583_v14, 4  ;;  %v588_v23 = vrot.slane %v586_v15, 5  ;;  %v602_v25 = vrot.slane %v600_v17, 5  ;;  %v1736_v28 = vld [vmem:[%s1891_s23 + $0x8] sm:$0xf]  ;;  %v851_v32 = vshrl.u32 %v834_v26, 16 }
  0x2b   : > { %v616_v19 = vpack.c.b16 %v611_v9, %v610_v8  ;;  %v598_v24 = vrot.slane %v597_v16, 4  ;;  %v854_v33 = vshll.u32 %v834_v26, 16  ;;  %v865_v34 = vshrl.u32 %v836_v27, 16  ;;  %v1620_v40 = vld [vmem:[%s1891_s23 + $0x30] sm:$0xf] }
  0x2c   : > { %v589_v30 = vsel %vm1922_vm4, %v584_v22, %v588_v23  ;;  %v868_v35 = vshll.u32 %v836_v27, 16  ;;  %v1211_v36 = vshrl.u32 %v1736_v28, 16  ;;  %v1214_v37 = vshll.u32 %v1736_v28, 16  ;;  %v837_v52 = vld [vmem:[%s1920_s28 + $0xc] sm:$0x1] }
  0x2d   : > { %v603_v31 = vsel %vm1922_vm4, %v598_v24, %v602_v25  ;;  %v1225_v38 = vshrl.u32 %v1738_v29, 16  ;;  %v1228_v39 = vshll.u32 %v1738_v29, 16  ;;  %v612_v42 = vunpack.c.l.b16 %v589_v30  ;;  %v1737_v57 = vld [vmem:[%s1891_s23 + $0xc] sm:$0x1]  ;;  %v1739_v58 = vld [vmem:[%s1891_s23 + $0x14] sm:$0x1] }
  0x2e   : > { %v853_v48 = vrot.slane %v851_v32, 4  ;;  %v856_v49 = vrot.slane %v854_v33, 5  ;;  %v867_v50 = vrot.slane %v865_v34, 4  ;;  %v870_v51 = vrot.slane %v868_v35, 5  ;;  %v1667_v62 = vld [vmem:[%s1933_s7 + $0x30] sm:$0xf] }
  0x2f   : > { %v1213_v53 = vrot.slane %v1211_v36, 4  ;;  %v1216_v54 = vrot.slane %v1214_v37, 5  ;;  %v1227_v55 = vrot.slane %v1225_v38, 4  ;;  %v1230_v56 = vrot.slane %v1228_v39, 5  ;;  %v1775_v63 = vld [vmem:[%s1933_s7 + $0x34] sm:$0xf0] }
  0x30   : > { %v1621_v59 = vor.u32 %v1763_v41, %v1620_v40  ;;  %v857_v0 = vor.u32 %v856_v49, %v853_v48  ;;  %v871_v2 = vor.u32 %v870_v51, %v867_v50  ;;  %v874_v3 = vshll.u32 %v837_v52, 16  ;;  %v838_v9 = vld [vmem:[%s1920_s28 + $0x10] sm:$0xf]  ;;  %v840_v10 = vld [vmem:[%s1920_s28 + $0x18] sm:$0xf] }
  0x31   : > { %v1217_v4 = vor.u32 %v1216_v54, %v1213_v53  ;;  %v1220_v5 = vshll.u32 %v1737_v57, 16  ;;  %v1231_v6 = vor.u32 %v1230_v56, %v1227_v55  ;;  %v1234_v7 = vshll.u32 %v1739_v58, 16  ;;  %v1740_v23 = vld [vmem:[%s1891_s23 + $0x18] sm:$0xf]  ;;  %v1742_v24 = vld [vmem:[%s1891_s23 + $0x20] sm:$0xf] }
  0x32   : > { %v1668_v8 = vor.u32 %v1775_v63, %v1667_v62  ;;  %v858_v11 = vrot.slane %v857_v0, 4  ;;  %v872_v13 = vrot.slane %v871_v2, 4  ;;  %v876_v14 = vrot.slane %v874_v3, 5  ;;  %v839_v29 = vld [vmem:[%s1920_s28 + $0x14] sm:$0x1] }
  0x33   : > { %1623 = vmatmul.msk.bf16.gmra.mxu1 %vm363_vm1, %v1613_v43  ;;  %v613_v43 = vunpack.c.l.b16 %v603_v31  ;;  %v1218_v15 = vrot.slane %v1217_v4, 4  ;;  %v1222_v16 = vrot.slane %v1220_v5, 5  ;;  %v1232_v17 = vrot.slane %v1231_v6, 4  ;;  %v841_v34 = vld [vmem:[%s1920_s28 + $0x1c] sm:$0x1] }
  0x34   : > { %1628 = vmatmul.msk.bf16.gmra.mxu2 %vm363_vm1, %v615_v44  ;;  %1649 = vmatmul.msk.bf16.gmra.mxu3 %vm363_vm1, %v1639_v45  ;;  %v1646_v44 = vld [vmem:[%s1920_s28 + $0x30] sm:$0xf]  ;;  %v1771_v45 = vld [vmem:[%s1920_s28 + $0x34] sm:$0xf0]  ;;  %v896_v22 = vshll.u32 %v840_v10, 16  ;;  %v877_v26 = vsel %vm1922_vm4, %v872_v13, %v876_v14  ;;  %v1239_v35 = vshrl.u32 %v1740_v23, 16 }
  0x35   : > { %1670 = vmatmul.msk.bf16.gmra.mxu0 %vm363_vm1, %v1660_v47  ;;  %v835_v47 = vld [vmem:[%s1920_s28 + $0x4] sm:$0x1]  ;;  %v617_v60 = vpack.c.b16 %v613_v43, %v612_v42  ;;  %v1647_v61 = vor.u32 %v1771_v45, %v1646_v44  ;;  %v1223_v27 = vsel %vm1922_vm4, %v1218_v15, %v1222_v16  ;;  %v1242_v36 = vshll.u32 %v1740_v23, 16  ;;  %v1689_v41 = vld [vmem:[%s1891_s23 + $0x8] sm:$0xf] }
  0x36   : > { %v860_v1 = vshll.u32 %v835_v47, 16  ;;  %v898_v33 = vrot.slane %v896_v22, 5  ;;  %v1253_v37 = vshrl.u32 %v1742_v24, 16  ;;  %v1256_v38 = vshll.u32 %v1742_v24, 16  ;;  %v1776_v42 = vld [vmem:[%s1891_s23 + $0xc] sm:$0xf0] }
  0x37   : > { %v965_v40 = vunpack.c.l.b16 %v877_v26  ;;  %v1324_v43 = vunpack.c.l.b16 %v1223_v27  ;;  %v1718_v45 = vld [vmem:[%s1876_s12 + $0x8] sm:$0xf]  ;;  %v1780_v47 = vld [vmem:[%s1876_s12 + $0xc] sm:$0xf0]  ;;  %v888_v49 = vshll.u32 %v839_v29, 16  ;;  %v902_v51 = vshll.u32 %v841_v34, 16 }
  0x38   : > { %v862_v12 = vrot.slane %v860_v1, 5  ;;  %v1241_v52 = vrot.slane %v1239_v35, 4  ;;  %v1244_v53 = vrot.slane %v1242_v36, 5  ;;  %v1255_v54 = vrot.slane %v1253_v37, 4  ;;  %v1741_v57 = vld [vmem:[%s1891_s23 + $0x1c] sm:$0x1] }
  0x39   : > { %v1258_v55 = vrot.slane %v1256_v38, 5  ;;  %v1743_v58 = vld [vmem:[%s1891_s23 + $0x24] sm:$0x1]  ;;  %v890_v63 = vrot.slane %v888_v49, 5  ;;  %v904_v1 = vrot.slane %v902_v51, 5  ;;  %v1248_v3 = vshll.u32 %v1741_v57, 16 }
  0x3a   : > { %v863_v25 = vsel %vm1922_vm4, %v858_v11, %v862_v12  ;;  %v1245_v2 = vor.u32 %v1244_v53, %v1241_v52  ;;  %v1262_v5 = vshll.u32 %v1743_v58, 16  ;;  %v842_v6 = vld [vmem:[%s1920_s28 + $0x20] sm:$0xf]  ;;  %v1746_v15 = vld [vmem:[%s1891_s23 + $0x30] sm:$0xf]  ;;  %vm1388_vm5 = vcmask 64512  }
  0x3b   : > { %v964_v39 = vunpack.c.l.b16 %v863_v25  ;;  %v1259_v4 = vor.u32 %v1258_v55, %v1255_v54  ;;  %v1250_v12 = vrot.slane %v1248_v3, 5  ;;  %v907_v16 = vshrl.u32 %v842_v6, 16  ;;  %v1777_v29 = vld [vmem:[%s1891_s23 + $0x1c] sm:$0xf0]  ;;  %v843_v35 = vld [vmem:[%s1920_s28 + $0x24] sm:$0x1] }
  0x3c   : > { %v1246_v11 = vrot.slane %v1245_v2, 4  ;;  %v1264_v14 = vrot.slane %v1262_v5, 5  ;;  %v1281_v22 = vshrl.u32 %v1746_v15, 16  ;;  %v1284_v23 = vshll.u32 %v1746_v15, 16  ;;  %v845_v36 = vld [vmem:[%s1920_s28 + $0x2c] sm:$0x1] }
  0x3d   : > { %v972_v56 = vpack.c.b16 %v965_v40, %v964_v39  ;;  %v1260_v13 = vrot.slane %v1259_v4, 4  ;;  %v1781_v39 = vld [vmem:[%s1876_s12 + $0x1c] sm:$0xf0]  ;;  %v916_v49 = vshll.u32 %v843_v35, 16  ;;  %v930_v51 = vshll.u32 %v845_v36, 16 }
  0x3e   : > { %v1251_v26 = vsel %vm1922_vm4, %v1246_v11, %v1250_v12  ;;  %v846_v3 = vld [vmem:[%s1920_s28 + $0x30] sm:$0xf]  ;;  %v848_v4 = vld [vmem:[%s1920_s28 + $0x38] sm:$0xf]  ;;  %vm1447_vm6 = vcmask 1040384   ;;  %vm1449_vm7 = vcmask 58368  }
  0x3f   : > { %v1265_v27 = vsel %vm1922_vm4, %v1260_v13, %v1264_v14  ;;  %v1326_v40 = vunpack.c.l.b16 %v1251_v26  ;;  %v949_v11 = vshrl.u32 %v848_v4, 16  ;;  %v952_v12 = vshll.u32 %v848_v4, 16  ;;  %v1730_v4 = vld [vmem:[%s1876_s12 + $0x38] sm:$0xf] }
  0x43   : > { %1624 = vmatmul.msk.bf16.gmra.mxu1 %vm363_vm1, %v1617_v18  ;;  %v1236_v18 = vrot.slane %v1234_v7, 5  ;;  %v844_v7 = vld [vmem:[%s1920_s28 + $0x28] sm:$0xf] }
  0x44   : > { %1629 = vmatmul.msk.bf16.gmra.mxu2 %vm363_vm1, %v616_v19  ;;  %1650 = vmatmul.msk.bf16.gmra.mxu3 %vm363_vm1, %v1643_v20  ;;  %v879_v19 = vshrl.u32 %v838_v9, 16  ;;  %v882_v20 = vshll.u32 %v838_v9, 16 }
  0x45   : > { %1671 = vmatmul.msk.bf16.gmra.mxu0 %vm363_vm1, %v1664_v21  ;;  %v893_v21 = vshrl.u32 %v840_v10, 16  ;;  %v1237_v28 = vsel %vm1922_vm4, %v1232_v17, %v1236_v18  ;;  %v1744_v10 = vld [vmem:[%s1891_s23 + $0x28] sm:$0xf]  ;;  %v910_v17 = vshll.u32 %v842_v6, 16  ;;  %v921_v18 = vshrl.u32 %v844_v7, 16 }
  0x46   : > { %v881_v30 = vrot.slane %v879_v19, 4  ;;  %v884_v31 = vrot.slane %v882_v20, 5  ;;  %v1325_v44 = vunpack.c.l.b16 %v1237_v28  ;;  %v924_v19 = vshll.u32 %v844_v7, 16  ;;  %v1693_v28 = vld [vmem:[%s1891_s23 + $0x18] sm:$0xf] }
  0x47   : > { %v895_v32 = vrot.slane %v893_v21, 4  ;;  %v1267_v20 = vshrl.u32 %v1744_v10, 16  ;;  %v1270_v21 = vshll.u32 %v1744_v10, 16  ;;  %v1694_v52 = vor.u32 %v1777_v29, %v1693_v28  ;;  %v1748_v7 = vld [vmem:[%s1891_s23 + $0x38] sm:$0xf] }
  0x48   : > { %v885_v48 = vor.u32 %v884_v31, %v881_v30  ;;  %v1722_v30 = vld [vmem:[%s1876_s12 + $0x18] sm:$0xf]  ;;  %v909_v31 = vrot.slane %v907_v16, 4  ;;  %v926_v34 = vrot.slane %v924_v19, 5  ;;  %v938_v10 = vshll.u32 %v846_v3, 16 }
  0x49   : > { %v899_v50 = vor.u32 %v898_v33, %v895_v32  ;;  %v912_v32 = vrot.slane %v910_v17, 5  ;;  %v923_v33 = vrot.slane %v921_v18, 4  ;;  %v1269_v37 = vrot.slane %v1267_v20, 4 }
  0x4a   : > { %v886_v62 = vrot.slane %v885_v48, 4  ;;  %v1272_v38 = vrot.slane %v1270_v21, 5  ;;  %v1723_v53 = vor.u32 %v1781_v39, %v1722_v30  ;;  %v1295_v15 = vshrl.u32 %v1748_v7, 16  ;;  %v1697_v21 = vld [vmem:[%s1891_s23 + $0x28] sm:$0xf] }
  0x4b   : > { %v900_v0 = vrot.slane %v899_v50, 4  ;;  %v913_v48 = vor.u32 %v912_v32, %v909_v31  ;;  %v927_v50 = vor.u32 %v926_v34, %v923_v33  ;;  %v1298_v16 = vshll.u32 %v1748_v7, 16  ;;  %v847_v31 = vld [vmem:[%s1920_s28 + $0x34] sm:$0x1]  ;;  %v849_v32 = vld [vmem:[%s1920_s28 + $0x3c] sm:$0x1] }
  0x4c   : > { %v1273_v54 = vor.u32 %v1272_v38, %v1269_v37  ;;  %v940_v26 = vrot.slane %v938_v10, 5  ;;  %v954_v28 = vrot.slane %v952_v12, 5  ;;  %v1297_v33 = vrot.slane %v1295_v15, 4 }
  0x4d   : > { %v905_v9 = vsel %vm1922_vm4, %v900_v0, %v904_v1  ;;  %v1300_v34 = vrot.slane %v1298_v16, 5 }
  0x4e   : > { %v967_v25 = vunpack.c.l.b16 %v905_v9  ;;  %v935_v9 = vshrl.u32 %v846_v3, 16  ;;  %v1779_v3 = vld [vmem:[%s1891_s23 + $0x3c] sm:$0xf0] }
  0x53   : > { %1625 = vmatmul.msk.bf16.gmra.mxu1 %vm363_vm1, %v1621_v59  ;;  %v1690_v59 = vor.u32 %v1776_v42, %v1689_v41  ;;  %v1327_v41 = vunpack.c.l.b16 %v1265_v27  ;;  %v1745_v42 = vld [vmem:[%s1891_s23 + $0x2c] sm:$0x1]  ;;  %v951_v27 = vrot.slane %v949_v11, 4 }
  0x54   : > { %1630 = vmatmul.msk.bf16.gmra.mxu2 %vm363_vm1, %v617_v60  ;;  %1651 = vmatmul.msk.bf16.gmra.mxu3 %vm363_vm1, %v1647_v61  ;;  %v1719_v60 = vor.u32 %v1780_v47, %v1718_v45  ;;  %v1332_v61 = vpack.c.b16 %v1325_v44, %v1324_v43  ;;  %v1283_v43 = vrot.slane %v1281_v22, 4  ;;  %v1286_v44 = vrot.slane %v1284_v23, 5  ;;  %v1747_v47 = vld [vmem:[%s1891_s23 + $0x34] sm:$0x1]  ;;  %v1778_v22 = vld [vmem:[%s1891_s23 + $0x2c] sm:$0xf0] }
  0x55   : > { %1672 = vmatmul.msk.bf16.gmra.mxu0 %vm363_vm1, %v1668_v8  ;;  %v891_v8 = vsel %vm1922_vm4, %v886_v62, %v890_v63  ;;  %v1276_v55 = vshll.u32 %v1745_v42, 16  ;;  %v1290_v58 = vshll.u32 %v1747_v47, 16  ;;  %v932_v62 = vrot.slane %v930_v51, 5  ;;  %v1726_v23 = vld [vmem:[%s1876_s12 + $0x28] sm:$0xf] }
  0x56   : > { %v966_v24 = vunpack.c.l.b16 %v891_v8  ;;  %v1287_v57 = vor.u32 %v1286_v44, %v1283_v43  ;;  %v1274_v63 = vrot.slane %v1273_v54, 4  ;;  %v1750_v8 = vld [vmem:[%s1891_s23 + $0x40] sm:$0xf]  ;;  %v1698_v38 = vor.u32 %v1778_v22, %v1697_v21 }
  0x57   : > { %v1278_v0 = vrot.slane %v1276_v55, 5  ;;  %v1292_v2 = vrot.slane %v1290_v58, 5  ;;  %v1309_v17 = vshrl.u32 %v1750_v8, 16  ;;  %v1312_v18 = vshll.u32 %v1750_v8, 16 }
  0x58   : > { %v973_v45 = vpack.c.b16 %v967_v25, %v966_v24  ;;  %v1288_v1 = vrot.slane %v1287_v57, 4  ;;  %v1782_v24 = vld [vmem:[%s1876_s12 + $0x2c] sm:$0xf0]  ;;  %v937_v25 = vrot.slane %v935_v9, 4  ;;  %v944_v43 = vshll.u32 %v847_v31, 16 }
  0x59   : > { %v1279_v13 = vsel %vm1922_vm4, %v1274_v63, %v1278_v0  ;;  %v1311_v35 = vrot.slane %v1309_v17, 4  ;;  %v1314_v36 = vrot.slane %v1312_v18, 5  ;;  %v1727_v39 = vor.u32 %v1782_v24, %v1726_v23 }
  0x5a   : > { %v1293_v14 = vsel %vm1922_vm4, %v1288_v1, %v1292_v2  ;;  %v1328_v29 = vunpack.c.l.b16 %v1279_v13  ;;  %v941_v42 = vor.u32 %v940_v26, %v937_v25  ;;  %v955_v44 = vor.u32 %v954_v28, %v951_v27  ;;  %v1701_v2 = vld [vmem:[%s1891_s23 + $0x38] sm:$0xf] }
  0x5b   : > { %v1329_v30 = vunpack.c.l.b16 %v1293_v14  ;;  %v1702_v10 = vor.u32 %v1779_v3, %v1701_v2 }
  0x5c   : > { %v956_v54 = vrot.slane %v955_v44, 4 }
  0x5d   : > { %v1334_v47 = vpack.c.b16 %v1329_v30, %v1328_v29 }
  0x63   : > { %1674 = vmatmul.msk.bf16.vlgmr.msra.gmra.mxu1 %vm363_vm1, %v972_v56  ;;  %v1333_v56 = vpack.c.b16 %v1327_v41, %v1326_v40  ;;  %v1749_v40 = vld [vmem:[%s1891_s23 + $0x3c] sm:$0x1]  ;;  %v1751_v41 = vld [vmem:[%s1891_s23 + $0x44] sm:$0x1] }
  0x64   : > { %1703 = vmatmul.msk.bf16.vlgmr.msra.gmra.mxu2 %vm363_vm1, %v1690_v59  ;;  %1732 = vmatmul.msk.bf16.vlgmr.msra.gmra.mxu3 %vm363_vm1, %v1719_v60  ;;  %v914_v59 = vrot.slane %v913_v48, 4  ;;  %v918_v60 = vrot.slane %v916_v49, 5  ;;  %v1301_v48 = vor.u32 %v1300_v34, %v1297_v33  ;;  %v1304_v49 = vshll.u32 %v1749_v40, 16 }
  0x65   : > { %1753 = vmatmul.msk.bf16.vlgmr.msra.gmra.mxu0 %vm363_vm1, %v1332_v61  ;;  %v928_v61 = vrot.slane %v927_v50, 4  ;;  %v1315_v50 = vor.u32 %v1314_v36, %v1311_v35  ;;  %v1318_v51 = vshll.u32 %v1751_v41, 16 }
  0x66   : > { %v919_v5 = vsel %vm1922_vm4, %v914_v59, %v918_v60  ;;  %v1306_v57 = vrot.slane %v1304_v49, 5 }
  0x67   : > { %v933_v6 = vsel %vm1922_vm4, %v928_v61, %v932_v62  ;;  %v968_v19 = vunpack.c.l.b16 %v919_v5  ;;  %v1316_v58 = vrot.slane %v1315_v50, 4  ;;  %v1320_v59 = vrot.slane %v1318_v51, 5  ;;  %v1783_v5 = vld [vmem:[%s1876_s12 + $0x3c] sm:$0xf0]  ;;  %s1584_s12 = sshll.u32 %s2217_s22, 1 }
  0x68   : > { %v969_v20 = vunpack.c.l.b16 %v933_v6  ;;  %v1731_v11 = vor.u32 %v1783_v5, %v1730_v4  ;;  %s322_s15 = scalar_lea.vmem %s2213_s6, %s1584_s12 }
  0x69   : > { %v1321_v63 = vsel %vm1922_vm4, %v1316_v58, %v1320_v59 }
  0x6a   : > { %v974_v37 = vpack.c.b16 %v969_v20, %v968_v19  ;;  %v1331_v7 = vunpack.c.l.b16 %v1321_v63 }
  0x73   : > { %1675 = vmatmul.msk.bf16.gmra.mxu1 %vm363_vm1, %v973_v45  ;;  %v958_v45 = vshll.u32 %v849_v32, 16 }
  0x74   : > { %1704 = vmatmul.msk.bf16.gmra.mxu2 %vm363_vm1, %v1694_v52  ;;  %1733 = vmatmul.msk.bf16.gmra.mxu3 %vm363_vm1, %v1723_v53  ;;  %v942_v52 = vrot.slane %v941_v42, 4  ;;  %v946_v53 = vrot.slane %v944_v43, 5 }
  0x75   : > { %1754 = vmatmul.msk.bf16.gmra.mxu0 %vm363_vm1, %v1333_v56  ;;  %v960_v55 = vrot.slane %v958_v45, 5  ;;  %v1302_v56 = vrot.slane %v1301_v48, 4 }
  0x76   : > { %v947_v60 = vsel %vm1922_vm4, %v942_v52, %v946_v53 }
  0x77   : > { %v961_v61 = vsel %vm1922_vm4, %v956_v54, %v960_v55  ;;  %v1307_v62 = vsel %vm1922_vm4, %v1302_v56, %v1306_v57  ;;  %v970_v0 = vunpack.c.l.b16 %v947_v60 }
  0x78   : > { %v971_v1 = vunpack.c.l.b16 %v961_v61  ;;  %v1330_v6 = vunpack.c.l.b16 %v1307_v62 }
  0x7a   : > { %v975_v8 = vpack.c.b16 %v971_v1, %v970_v0  ;;  %v1335_v12 = vpack.c.b16 %v1331_v7, %v1330_v6 }
  0x83   : > { %1676 = vmatmul.msk.bf16.gmra.mxu1 %vm363_vm1, %v974_v37 }
  0x84   : > { %1705 = vmatmul.msk.bf16.gmra.mxu2 %vm363_vm1, %v1698_v38  ;;  %1734 = vmatmul.msk.bf16.gmra.mxu3 %vm363_vm1, %v1727_v39 }
  0x85   : > { %1755 = vmatmul.msk.bf16.gmra.mxu0 %vm363_vm1, %v1334_v47 }
  0x90   : > { %v394_v9 = vpop.f32.mrf.mxu1 }
  0x92   : > { %v389_v13 = vpop.f32.mrf.mxu0 }
  0x93   : > { %1677 = vmatmul.msk.bf16.gmra.mxu1 %vm363_vm1, %v975_v8 }
  0x94   : > { %1706 = vmatmul.msk.bf16.gmra.mxu2 %vm363_vm1, %v1702_v10  ;;  %1735 = vmatmul.msk.bf16.gmra.mxu3 %vm363_vm1, %v1731_v11 }
  0x95   : > { %1756 = vmatmul.msk.bf16.gmra.mxu0 %vm363_vm1, %v1335_v12 }
  0x97   : > { %v2096_v46 = vpop.f32.mrf.mxu2  ;;  %v2098_v14 = vpop.f32.mrf.mxu3 }
  0x98   : > { %v2100_v15 = vpop.f32.mrf.mxu1 }
  0x9a   : > { %v391_v16 = vpop.f32.mrf.mxu0 }
  0x9f   : > { %v2102_v17 = vpop.f32.mrf.mxu2  ;;  %v2104_v18 = vpop.f32.mrf.mxu3 }
  0xa0   : > { %v453_v19 = vpop.f32.mrf.mxu1 }
  0xa1   : > { %v454_v49 = vadd.f32 %v453_v19, %v389_v13 }
  0xa2   : > { %v806_v20 = vpop.f32.mrf.mxu0 }
  0xa7   : > { %v642_v21 = vpop.f32.mrf.mxu2  ;;  %v724_v22 = vpop.f32.mrf.mxu3 }
  0xa8   : > { %v455_v23 = vpop.f32.mrf.mxu1  ;;  %v662_v51 = vadd.f32 %v642_v21, %v454_v49 }
  0xa9   : > { %v456_v56 = vadd.f32 %v455_v23, %v391_v16 }
  0xaa   : > { %v808_v24 = vpop.f32.mrf.mxu0  ;;  %v744_v54 = vadd.f32 %v724_v22, %v662_v51 }
  0xac   : > { %v826_v59 = vadd.f32 %v806_v20, %v744_v54 }
  0xaf   : > { %v644_v25 = vpop.f32.mrf.mxu2  ;;  %v726_v26 = vpop.f32.mrf.mxu3 }
  0xb0   : > { %v458_v27 = vpop.f32.mrf.mxu1  ;;  %v663_v58 = vadd.f32 %v644_v25, %v456_v56 }
  0xb1   : > { %v459_v2 = vadd.f32 %v458_v27, %v394_v9 }
  0xb2   : > { %v811_v28 = vpop.f32.mrf.mxu0  ;;  %v745_v63 = vadd.f32 %v726_v26, %v663_v58 }
  0xb4   : > { %v827_v7 = vadd.f32 %v808_v24, %v745_v63 }
  0xb7   : > { %v647_v29 = vpop.f32.mrf.mxu2  ;;  %v729_v30 = vpop.f32.mrf.mxu3 }
  0xb8   : > { %v460_v31 = vpop.f32.mrf.mxu1  ;;  %v664_v5 = vadd.f32 %v647_v29, %v459_v2 }
  0xb9   : > { %v461_v16 = vadd.f32 %v460_v31, %v2100_v15 }
  0xba   : > { %v2106_v32 = vpop.f32.mrf.mxu0  ;;  %v746_v12 = vadd.f32 %v729_v30, %v664_v5 }
  0xbc   : > { %v828_v25 = vadd.f32 %v811_v28, %v746_v12 }
  0xbf   : > { %v649_v33 = vpop.f32.mrf.mxu2  ;;  %v731_v34 = vpop.f32.mrf.mxu3 }
  0xc0   : > { %v2108_v35 = vpop.f32.mrf.mxu1  ;;  %v665_v21 = vadd.f32 %v649_v33, %v461_v16 }
  0xc1   : > { %v464_v56 = vadd.f32 %v2108_v35, %v2096_v46 }
  0xc2   : > { %v2110_v36 = vpop.f32.mrf.mxu0  ;;  %v747_v54 = vadd.f32 %v731_v34, %v665_v21 }
  0xc7   : > { %v2112_v37 = vpop.f32.mrf.mxu2  ;;  %v2114_v38 = vpop.f32.mrf.mxu3 }
  0xc8   : > { %v2116_v39 = vpop.f32.mrf.mxu1 }
  0xca   : > { %v2118_v40 = vpop.f32.mrf.mxu0 }
  0xcf   : > { %v2120_v41 = vpop.f32.mrf.mxu2  ;;  %v2122_v42 = vpop.f32.mrf.mxu3 }
  0xd0   : > { %v2124_v43 = vpop.f32.mrf.mxu1 }
  0xd2   : > { %v2126_v44 = vpop.f32.mrf.mxu0 }
  0xd7   : > { %v2128_v45 = vpop.f32.mrf.mxu2  ;;  %v2130_v47 = vpop.f32.mrf.mxu3 }
  0xd8   : > { %v2132_v48 = vpop.f32.mrf.mxu1 }
  0xda   : > { %v2134_v50 = vpop.f32.mrf.mxu0 }
  0xdf   : > { %v2136_v52 = vpop.f32.mrf.mxu2  ;;  %v2138_v53 = vpop.f32.mrf.mxu3 }
  0xe0   : > { %v1000_v55 = vpop.f32.mrf.mxu1 }
  0xe1   : > { %v1020_v60 = vadd.f32 %v1000_v55, %v826_v59  ;;  %v666_v59 = vadd.f32 %v2112_v37, %v464_v56 }
  0xe2   : > { %v1360_v57 = vpop.f32.mrf.mxu0 }
  0xe7   : > { %v1083_v61 = vpop.f32.mrf.mxu2  ;;  %v1166_v62 = vpop.f32.mrf.mxu3 }
  0xe8   : > { %v1103_v0 = vadd.f32 %v1083_v61, %v1020_v60  ;;  %v1002_v1 = vpop.f32.mrf.mxu1  ;;  %v829_v61 = vadd.f32 %v2106_v32, %v747_v54  ;;  %v466_v32 = vadd.f32 %v2116_v39, %v2102_v17 }
  0xe9   : > { %v1021_v8 = vadd.f32 %v1002_v1, %v827_v7 }
  0xea   : > { %v1186_v3 = vadd.f32 %v1166_v62, %v1103_v0  ;;  %v1362_v4 = vpop.f32.mrf.mxu0 }
  0xec   : > { %v1380_v6 = vadd.f32 %v1360_v57, %v1186_v3  ;;  %v748_v3 = vadd.f32 %v2114_v38, %v666_v59 }
  0xee   : > { %1389 = vst.msk [vmem:[%s2144_s11] sm:$0xff] %vm1388_vm5, %v1380_v6  ;;  %v1418_v22 = vmul.f32 %v1380_v6, %v1380_v6  ;;  %v1397_v26 = vsel %vm1388_vm5, %v1380_v6, 0.0  ;;  %v667_v6 = vadd.f32 %v2120_v41, %v466_v32 }
  0xef   : > { %v1085_v10 = vpop.f32.mrf.mxu2  ;;  %v1168_v11 = vpop.f32.mrf.mxu3 }
  0xf0   : > { %v1104_v9 = vadd.f32 %v1085_v10, %v1021_v8  ;;  %v1005_v13 = vpop.f32.mrf.mxu1  ;;  %v1426_v15 = vsel %vm1388_vm5, %v1418_v22, 0.0  ;;  %v830_v8 = vadd.f32 %v2110_v36, %v748_v3  ;;  %v469_v36 = vadd.f32 %v2124_v43, %v2098_v14 }
  0xf1   : > { %v1022_v29 = vadd.f32 %v1005_v13, %v828_v25 }
  0xf2   : > { %v1187_v19 = vadd.f32 %v1168_v11, %v1104_v9  ;;  %v1365_v20 = vpop.f32.mrf.mxu0  ;;  %v668_v22 = vadd.f32 %v2128_v45, %v469_v36 }
  0xf4   : > { %v1381_v23 = vadd.f32 %v1362_v4, %v1187_v19  ;;  %v749_v19 = vadd.f32 %v2122_v42, %v667_v6 }
  0xf6   : > { %1390 = vst.msk [vmem:[%s2144_s11 + $0x8] sm:$0xff] %vm1388_vm5, %v1381_v23  ;;  %v1398_v24 = vsel %vm1388_vm5, %v1381_v23, 0.0  ;;  %v1419_v27 = vmul.f32 %v1381_v23, %v1381_v23  ;;  %v831_v25 = vadd.f32 %v2118_v40, %v749_v19  ;;  %v471_v40 = vadd.f32 %v2132_v48, %v2104_v18 }
  0xf7   : > { %v1399_v30 = vadd.f32 %v1398_v24, %v1397_v26  ;;  %v1088_v49 = vpop.f32.mrf.mxu2  ;;  %v1171_v51 = vpop.f32.mrf.mxu3 }
  0xf8   : > { %v1427_v31 = vsel %vm1388_vm5, %v1419_v27, 0.0  ;;  %v1105_v33 = vadd.f32 %v1088_v49, %v1022_v29  ;;  %v1007_v55 = vpop.f32.mrf.mxu1 }
  0xf9   : > { %v1428_v28 = vadd.f32 %v1427_v31, %v1426_v15  ;;  %v1023_v63 = vadd.f32 %v1007_v55, %v829_v61  ;;  %v669_v31 = vadd.f32 %v2136_v52, %v471_v40 }
  0xfa   : > { %v1188_v57 = vadd.f32 %v1171_v51, %v1105_v33  ;;  %v1367_v58 = vpop.f32.mrf.mxu0  ;;  %v750_v51 = vadd.f32 %v2130_v47, %v668_v22 }
  0xfc   : > { %v1382_v60 = vadd.f32 %v1365_v20, %v1188_v57  ;;  %v832_v55 = vadd.f32 %v2126_v44, %v750_v51 }
  0xfe   : > { %1391 = vst.msk [vmem:[%s2144_s11 + $0x10] sm:$0xff] %vm1388_vm5, %v1382_v60  ;;  %v1400_v34 = vsel %vm1388_vm5, %v1382_v60, 0.0  ;;  %v1420_v62 = vmul.f32 %v1382_v60, %v1382_v60  ;;  %v751_v60 = vadd.f32 %v2138_v53, %v669_v31 }
  0xff   : > { %v1401_v0 = vadd.f32 %v1400_v34, %v1399_v30  ;;  %v1090_v1 = vpop.f32.mrf.mxu2  ;;  %v1173_v2 = vpop.f32.mrf.mxu3 }
 0x100   : > { %v1429_v46 = vsel %vm1388_vm5, %v1420_v62, 0.0  ;;  %v1106_v35 = vadd.f32 %v1090_v1, %v1023_v63  ;;  %v1010_v4 = vpop.f32.mrf.mxu1  ;;  %v833_v63 = vadd.f32 %v2134_v50, %v751_v60 }
 0x101   : > { %v1430_v37 = vadd.f32 %v1429_v46, %v1428_v28  ;;  %v1024_v12 = vadd.f32 %v1010_v4, %v830_v8 }
 0x102   : > { %v1189_v5 = vadd.f32 %v1173_v2, %v1106_v35  ;;  %v1370_v10 = vpop.f32.mrf.mxu0 }
 0x104   : > { %v1383_v7 = vadd.f32 %v1367_v58, %v1189_v5 }
 0x106   : > { %1392 = vst.msk [vmem:[%s2144_s11 + $0x18] sm:$0xff] %vm1388_vm5, %v1383_v7  ;;  %v1402_v11 = vsel %vm1388_vm5, %v1383_v7, 0.0  ;;  %v1421_v38 = vmul.f32 %v1383_v7, %v1383_v7 }
 0x107   : > { %v1403_v9 = vadd.f32 %v1402_v11, %v1401_v0  ;;  %v1093_v13 = vpop.f32.mrf.mxu2  ;;  %v1176_v16 = vpop.f32.mrf.mxu3 }
 0x108   : > { %v1431_v17 = vsel %vm1388_vm5, %v1421_v38, 0.0  ;;  %v1107_v39 = vadd.f32 %v1093_v13, %v1024_v12  ;;  %v1012_v41 = vpop.f32.mrf.mxu1 }
 0x109   : > { %v1432_v20 = vadd.f32 %v1431_v17, %v1430_v37  ;;  %v1025_v42 = vadd.f32 %v1012_v41, %v831_v25 }
 0x10a   : > { %v1190_v21 = vadd.f32 %v1176_v16, %v1107_v39  ;;  %v1372_v27 = vpop.f32.mrf.mxu0 }
 0x10c   : > { %v1384_v23 = vadd.f32 %v1370_v10, %v1190_v21 }
 0x10e   : > { %1393 = vst.msk [vmem:[%s2144_s11 + $0x20] sm:$0xff] %vm1388_vm5, %v1384_v23  ;;  %v1404_v26 = vsel %vm1388_vm5, %v1384_v23, 0.0  ;;  %v1422_v24 = vmul.f32 %v1384_v23, %v1384_v23 }
 0x10f   : > { %v1405_v29 = vadd.f32 %v1404_v26, %v1403_v9  ;;  %v1095_v30 = vpop.f32.mrf.mxu2  ;;  %v1178_v49 = vpop.f32.mrf.mxu3 }
 0x110   : > { %v1433_v14 = vsel %vm1388_vm5, %v1422_v24, 0.0  ;;  %v1108_v43 = vadd.f32 %v1095_v30, %v1025_v42  ;;  %v1015_v54 = vpop.f32.mrf.mxu1 }
 0x111   : > { %v1434_v45 = vadd.f32 %v1433_v14, %v1432_v20  ;;  %v1026_v56 = vadd.f32 %v1015_v54, %v832_v55 }
 0x112   : > { %v1191_v15 = vadd.f32 %v1178_v49, %v1108_v43  ;;  %v1375_v52 = vpop.f32.mrf.mxu0 }
 0x114   : > { %v1385_v33 = vadd.f32 %v1372_v27, %v1191_v15 }
 0x116   : > { %1394 = vst.msk [vmem:[%s2144_s11 + $0x28] sm:$0xff] %vm1388_vm5, %v1385_v33  ;;  %v1406_v28 = vsel %vm1388_vm5, %v1385_v33, 0.0  ;;  %v1423_v47 = vmul.f32 %v1385_v33, %v1385_v33 }
 0x117   : > { %v1407_v57 = vadd.f32 %v1406_v28, %v1405_v29  ;;  %v1098_v58 = vpop.f32.mrf.mxu2  ;;  %v1181_v59 = vpop.f32.mrf.mxu3 }
 0x118   : > { %v1435_v18 = vsel %vm1388_vm5, %v1423_v47, 0.0  ;;  %v1109_v48 = vadd.f32 %v1098_v58, %v1026_v56  ;;  %v1017_v62 = vpop.f32.mrf.mxu1 }
 0x119   : > { %v1436_v61 = vadd.f32 %v1435_v18, %v1434_v45  ;;  %v1027_v2 = vadd.f32 %v1017_v62, %v833_v63 }
 0x11a   : > { %v1192_v34 = vadd.f32 %v1181_v59, %v1109_v48  ;;  %v1377_v5 = vpop.f32.mrf.mxu0 }
 0x11c   : > { %v1386_v44 = vadd.f32 %v1375_v52, %v1192_v34 }
 0x11e   : > { %1395 = vst.msk [vmem:[%s2144_s11 + $0x30] sm:$0xff] %vm1388_vm5, %v1386_v44  ;;  %v1408_v0 = vsel %vm1388_vm5, %v1386_v44, 0.0  ;;  %v1424_v1 = vmul.f32 %v1386_v44, %v1386_v44 }
 0x11f   : > { %v1409_v3 = vadd.f32 %v1408_v0, %v1407_v57  ;;  %v1100_v46 = vpop.f32.mrf.mxu2  ;;  %v1183_v37 = vpop.f32.mrf.mxu3 }
 0x120   : > { %v1437_v53 = vsel %vm1388_vm5, %v1424_v1, 0.0  ;;  %v1110_v35 = vadd.f32 %v1100_v46, %v1027_v2 }
 0x121   : > { %v1438_v4 = vadd.f32 %v1437_v53, %v1436_v61 }
 0x122   : > { %v1193_v32 = vadd.f32 %v1183_v37, %v1110_v35 }
 0x124   : > { %v1387_v6 = vadd.f32 %v1377_v5, %v1193_v32 }
 0x126   : > { %1396 = vst.msk [vmem:[%s2144_s11 + $0x38] sm:$0xff] %vm1388_vm5, %v1387_v6  ;;  %v1410_v50 = vsel %vm1388_vm5, %v1387_v6, 0.0  ;;  %v1425_v7 = vmul.f32 %v1387_v6, %v1387_v6 }
 0x127   : > { %v1411_v8 = vadd.f32 %v1410_v50, %v1409_v3 }
 0x128   : > { %v1439_v10 = vsel %vm1388_vm5, %v1425_v7, 0.0 }
 0x129   : > { %v1412_v11 = vrot.slane %v1411_v8, 4  ;;  %v1440_v38 = vadd.f32 %v1439_v10, %v1438_v4 }
 0x12b   : > { %v1413_v12 = vadd.f32 %v1412_v11, %v1411_v8  ;;  %v1441_v9 = vrot.slane %v1440_v38, 4 }
 0x12d   : > { %v1414_v13 = vrot.slane %v1413_v12, 2  ;;  %v1442_v16 = vadd.f32 %v1441_v9, %v1440_v38 }
 0x12f   : > { %v1415_v19 = vadd.f32 %v1414_v13, %v1413_v12  ;;  %v1443_v17 = vrot.slane %v1442_v16, 2 }
 0x131   : > { %v1416_v39 = vrot.slane %v1415_v19, 1  ;;  %v1444_v41 = vadd.f32 %v1443_v17, %v1442_v16 }
 0x133   : > { %v1445_v20 = vrot.slane %v1444_v41, 1  ;;  %v1417_v36 = vadd.f32 %v1416_v39, %v1415_v19 }
 0x135   : > { %v1446_v21 = vadd.f32 %v1445_v20, %v1444_v41 }
 0x137   : > { %v1448_v22 = vsel %vm1447_vm6, %v1417_v36, %v1446_v21 }
 0x138   : > { %1450 = vst.msk [vmem:[%s322_s15] sm:$0x3] %vm1449_vm7, %v1448_v22 }
 0x139 PF: > { %s17_s21 = sadd.s32 1, %s1802_s21  }
 0x13a   : > { %p14_p4 = scmp.ge.s32.totalorder %s17_s21, 4  }
 0x13c   :  { %16 = sbr.rel (!%p14_p4) target bundleno = 1 (0x1), region = 101 }

// kernel: unet_level_forward.5
= control target key start
LH: loop header
LB: loop body
LE: loop exit
PB: predicated region body
PF: predicated region fallthrough
CT: control target
= control target key end

     0   :  { %s314_s12 = smov 0   ;;  %s337_s0 = inlined_call_operand.vmem [shape: f32[2,16,64], index: 0, kind: input, shape index: {}]   ;;  %s338_s1 = inlined_call_operand.vmem [shape: f32[1,64], index: 1, kind: input, shape index: {}]   ;;  %s339_s2 = inlined_call_operand.vmem [shape: f32[1,64], index: 2, kind: input, shape index: {}]   ;;  %s340_s3 = inlined_call_operand.vmem [shape: f32[2,16,64], index: 3, kind: output, shape index: {}]  }
   0x1 LB: > { %s255_s13 = sadd.s32 4294967295, %s292_s12   ;;  %p259_p0 = scmp.ge.s32.totalorder %s292_s12, 1  ;;  %s292_s12 = sphi %s314_s12, %s13_s12  }
   0x2   : > { %p137_p1 = scmp.lt.s32.totalorder %s292_s12, 3 }
   0x4   : > { %p138_p2 = pnand %p259_p0, %p137_p1 }
   0x5   : > { %p161_p3 = scmp.lt.s32.totalorder (!%p138_p2), %s255_s13, 1 }
   0x6   : > { %141 = sbr.rel (%p138_p2) target bundleno = 43 (0x2b), region = 32 }
   0xb   : > { %s342_s13 = smov (!%p161_p3, %s255_s13), 1  ;;  %v276_v0 = vld [vmem:[%s338_s1] ss:$0 sm:$0xff]  ;;  %vm197_vm0 = vcmask 523264  }
   0xc   : > { %s266_s16 = sshll.u32 %s342_s13, 4  ;;  %v277_v1 = vld [vmem:[%s339_s2] ss:$0 sm:$0xff] }
   0xd   : > { %s165_s19 = scalar_lea.vmem %s337_s0, %s266_s16  ;;  %s170_s24 = scalar_lea.vmem %s340_s3, %s266_s16 }
   0xe   : > { %v171_v2 = vld [vmem:[%s165_s19] sm:$0xff]  ;;  %v172_v3 = vld [vmem:[%s165_s19 + $0x8] sm:$0xff] }
   0xf   : > { %v177_v4 = vmul.f32 %v276_v0, %v171_v2  ;;  %v178_v5 = vmul.f32 %v276_v0, %v172_v3 }
  0x11   : > { %v183_v6 = vadd.f32 %v277_v1, %v177_v4  ;;  %v184_v7 = vadd.f32 %v277_v1, %v178_v5 }
  0x13   : > { %v185_v8 = vsub.f32 0.0, %v183_v6  ;;  %v186_v9 = vsub.f32 0.0, %v184_v7 }
  0x15   : > { %v187_v10 = vmul.f32 1.442695, %v185_v8  ;;  %v189_v11 = vmul.f32 1.442695, %v186_v9 }
  0x17   : > { %278 = vpow2.f32 %v187_v10 }
  0x18   : > { %280 = vpow2.f32 %v189_v11 }
  0x1d   : > { %v279_v12 = vpop.eup %278 }
  0x1e   : > { %v281_v13 = vpop.eup %280  ;;  %v191_v14 = vadd.f32 1.0, %v279_v12 }
  0x1f   : > { %v192_v15 = vadd.f32 1.0, %v281_v13 }
  0x20   : > { %282 = vrcp.f32 %v191_v14 }
  0x21   : > { %284 = vrcp.f32 %v192_v15 }
  0x26   : > { %v283_v16 = vpop.eup %282 }
  0x27   : > { %v285_v17 = vpop.eup %284  ;;  %v195_v18 = vmul.f32 %v283_v16, %v183_v6 }
  0x28   : > { %v196_v19 = vmul.f32 %v285_v17, %v184_v7 }
  0x29   : > { %198 = vst.msk [vmem:[%s170_s24] sm:$0xff] %vm197_vm0, %v195_v18 }
  0x2a   : > { %199 = vst.msk [vmem:[%s170_s24 + $0x8] sm:$0xff] %vm197_vm0, %v196_v19 }
  0x2b PF: > { %s13_s12 = sadd.s32 1, %s292_s12  }
  0x2c   : > { %p10_p4 = scmp.ge.s32.totalorder %s13_s12, 4  }
  0x2e   :  { %12 = sbr.rel (!%p10_p4) target bundleno = 1 (0x1), region = 62 }

</bundles_post_ra>
